<compile_context>
chip_gen: v5e
topology: v5e:2x2
jax: 0.10.0
libtpu: 0.0.40
codegen_flags: <defaults>
</compile_context>

<pallas_src>
import jax
import jax.numpy as jnp
from jax.experimental import pallas as pl
from jax.experimental.pallas import tpu as pltpu

LANE = 128


def _round_up(v, m):
    return ((v + m - 1) // m) * m


def _pad2(a, rows, cols, dtype=jnp.float32):
    out = jnp.zeros((rows, cols), jnp.float32)
    out = out.at[: a.shape[0], : a.shape[1]].set(a.astype(jnp.float32))
    return out.astype(dtype)


def _gcn_pool_kernel(a_ref, u_ref, w2_ref, b1_ref, pa_ref, part_ref):
    """One row tile of nodes: layer-1 GCN (full-K dot), layer-2 feature
    projection, and this tile's partial (mean-pool x layer-2 aggregation)."""
    # Layer 1: h1 = relu(A_hat[rows, :] @ (x @ W1) + b1)
    # bf16 MXU inputs, f32 accumulation, f32 elementwise.
    h1 = jnp.maximum(
        jnp.dot(a_ref[...], u_ref[...], preferred_element_type=jnp.float32)
        + b1_ref[0:1, :],
        0.0)
    # Layer 2 feature projection: y = h1 @ W2.
    y = jnp.dot(h1.astype(jnp.bfloat16), w2_ref[...],
                preferred_element_type=jnp.float32)
    # Mean pool + layer-2 aggregation folded into PA = pool @ A_hat:
    # partial pooled contribution of this row tile (lane-dense f32 store).
    part_ref[...] = jnp.dot(pa_ref[...], y.astype(jnp.bfloat16),
                            preferred_element_type=jnp.float32)


def _build_norm_adj(edge_index, num_nodes):
    """Dense A_hat = D^-1/2 (A + I) D^-1/2, PyG add_remaining_self_loops semantics."""
    # TODO(synk): for large/sparse graphs replace this dense O(N^2) build (and
    # the dense A_hat stream in the kernel) with a sorted-edge-list segment-sum
    # aggregation driven by PrefetchScalarGridSpec scalar prefetch.
    src = edge_index[0].astype(jnp.int32)
    dst = edge_index[1].astype(jnp.int32)
    a = jnp.zeros((num_nodes, num_nodes), jnp.float32)
    a = a.at[dst, src].add(1.0)                      # message flows src -> dst
    diag = jnp.diagonal(a)
    # only add a self loop where none exists (PyG add_remaining_self_loops)
    a = a + jnp.diag(jnp.where(diag > 0, 0.0, 1.0))
    deg = a.sum(axis=1)
    dinv = jnp.where(deg > 0, 1.0 / jnp.sqrt(deg), 0.0)
    return dinv[:, None] * a * dinv[None, :]


def _build_pool_matrix(batch_idx, num_graphs):
    onehot = (batch_idx[None, :] == jnp.arange(num_graphs)[:, None]).astype(jnp.float32)
    counts = onehot.sum(axis=1, keepdims=True)
    return onehot / jnp.maximum(counts, 1.0), counts


def init_params(key, d_in, d_hidden, d_out, d_glob):
    ks = jax.random.split(key, 6)
    scale = 0.1
    return {
        "w1":   scale * jax.random.normal(ks[0], (d_in, d_hidden), jnp.float32),
        "b1":   jnp.zeros((1, d_hidden), jnp.float32),
        "w2":   scale * jax.random.normal(ks[1], (d_hidden, d_out), jnp.float32),
        "b2":   jnp.zeros((1, d_out), jnp.float32),
        # head Linear(d_out + d_glob, 10) split into pooled part and glob part
        "wh1a": scale * jax.random.normal(ks[2], (d_out, 10), jnp.float32),
        "wh1b": scale * jax.random.normal(ks[3], (d_glob, 10), jnp.float32),
        "bh1":  scale * jax.random.normal(ks[4], (1, 10), jnp.float32),
        "wh2":  scale * jax.random.normal(ks[5], (10, 1), jnp.float32),
        "bh2":  jnp.zeros((1, 1), jnp.float32),
    }


def gnn_forward(params, x, edge_index, edge_attr, batch_idx, glob_vecs,
                num_graphs, *, tile=512):
    # edge_attr is unused (matches the PyTorch forward, which never feeds it to GCNConv)
    del edge_attr
    n, d_in = x.shape
    d_hidden = params["w1"].shape[1]
    d_out = params["w2"].shape[1]
    d_glob = params["wh1b"].shape[0]

    n_p = _round_up(n, tile)
    dh_p = _round_up(d_hidden, LANE)
    dout_p = _round_up(d_out, LANE)
    g_p = _round_up(max(num_graphs, 1), 8)
    n_tiles = n_p // tile

    # --- glue (wrapper-side, not the hot path) ---
    a_hat = _build_norm_adj(edge_index, n)                     # [n, n] f32
    pool, counts = _build_pool_matrix(batch_idx, num_graphs)   # [G, n], [G, 1]
    pa = pool @ a_hat            # mean pool folded through the layer-2 aggregation
    u = x @ params["w1"]         # x @ W1 hoisted out of the kernel

    # MXU operands in bf16 (f32 accumulation in-kernel); biases stay f32.
    # TODO(synk): on v7x the A_hat stream could be fed as fp8 (e4m3) to halve
    # the dominant HBM traffic; kept bf16 for portability across v5e/v6e.
    a_p = _pad2(a_hat, n_p, n_p, jnp.bfloat16)
    u_p = _pad2(u, n_p, dh_p, jnp.bfloat16)
    w2_p = _pad2(params["w2"], dh_p, dout_p, jnp.bfloat16)
    pa_p = _pad2(pa, g_p, n_p, jnp.bfloat16)
    b1_p = _pad2(params["b1"], 8, dh_p)                        # f32, row 0 meaningful

    # Explicit scoped-VMEM budget: double-buffered operands/outputs plus
    # headroom for the f32 h1/y temporaries; capped at v7x's 64 MiB physical.
    vmem_bytes = 2 * (tile * n_p * 2        # A_hat row block (bf16)
                      + n_p * dh_p * 2      # u (resident)
                      + dh_p * dout_p * 2   # W2 (resident)
                      + 8 * dh_p * 4        # b1
                      + g_p * tile * 2      # PA column block
                      + g_p * dout_p * 4)   # partial pooled output block
    vmem_bytes = min(vmem_bytes + (8 << 20), 64 << 20)

    partials = pl.pallas_call(
        _gcn_pool_kernel,
        out_shape=jax.ShapeDtypeStruct((n_tiles, g_p, dout_p), jnp.float32),
        grid=(n_tiles,),
        in_specs=[
            pl.BlockSpec((tile, n_p), lambda i: (i, 0)),       # A_hat rows, full K
            pl.BlockSpec((n_p, dh_p), lambda i: (0, 0)),       # u = x @ W1 (resident)
            pl.BlockSpec((dh_p, dout_p), lambda i: (0, 0)),    # W2 (resident)
            pl.BlockSpec((8, dh_p), lambda i: (0, 0)),         # b1
            pl.BlockSpec((g_p, tile), lambda i: (0, i)),       # PA columns for this tile
        ],
        out_specs=pl.BlockSpec((None, g_p, dout_p), lambda i: (i, 0, 0)),
        compiler_params=pltpu.CompilerParams(
            dimension_semantics=("parallel",),   # megacore-shardable on v7x
            vmem_limit_bytes=int(vmem_bytes)),
    )(a_p, u_p, w2_p, b1_p, pa_p)

    # --- tiny epilogue in the wrapper (negligible FLOPs) ---
    pooled = partials.sum(axis=0)[:num_graphs, :d_out]         # [G, d_out]
    has_nodes = (counts > 0).astype(jnp.float32)               # guard empty graphs
    pooled = pooled + params["b2"] * has_nodes
    z = jnp.concatenate([pooled, glob_vecs.reshape(-1, d_glob)], axis=1)
    w_head = jnp.concatenate([params["wh1a"], params["wh1b"]], axis=0)
    z = jnp.maximum(z @ w_head + params["bh1"], 0.0)
    return jax.nn.sigmoid(z @ params["wh2"] + params["bh2"])


def _reference_forward(params, x, edge_index, batch_idx, glob_vecs, num_graphs):
    """Pure-JAX f32 reference in the original (unfolded) op order."""
    a_hat = _build_norm_adj(edge_index, x.shape[0])
    pool, _ = _build_pool_matrix(batch_idx, num_graphs)
    d_glob = params["wh1b"].shape[0]
    h = jnp.maximum(a_hat @ (x @ params["w1"]) + params["b1"], 0.0)
    h = a_hat @ (h @ params["w2"]) + params["b2"]
    pooled = pool @ h
    z = jnp.concatenate([pooled, glob_vecs.reshape(-1, d_glob)], axis=1)
    w_full = jnp.concatenate([params["wh1a"], params["wh1b"]], axis=0)
    z = jnp.maximum(z @ w_full + params["bh1"], 0.0)
    return jax.nn.sigmoid(z @ params["wh2"] + params["bh2"])


if __name__ == "__main__":
    # 600 nodes / 2 graphs / 2400 edges; with tile=256 -> padded N = 768 and a
    # 3-step row-tile grid, exercising the parallel partial-pooled path.
    d_in, d_hidden, d_out, d_glob = 4, 32, 8, 10
    num_nodes, num_graphs, num_edges = 600, 2, 2400

    key = jax.random.PRNGKey(0)
    k_x, k_e1, k_e2, k_attr, k_glob, k_params = jax.random.split(key, 6)

    x = jax.random.normal(k_x, (num_nodes, d_in), jnp.float32)
    src = jax.random.randint(k_e1, (num_edges,), 0, num_nodes)
    dst = jax.random.randint(k_e2, (num_edges,), 0, num_nodes)
    dst = jnp.where(dst == src, (dst + 1) % num_nodes, dst)     # no explicit self loops
    edge_index = jnp.stack([src, dst], axis=0).astype(jnp.int32)   # [2, E]
    edge_attr = jax.random.normal(k_attr, (num_edges, 3), jnp.float32)  # unused
    half = num_nodes // 2
    batch_idx = jnp.concatenate([jnp.zeros(half, jnp.int32),
                                 jnp.ones(num_nodes - half, jnp.int32)])
    glob_vecs = jax.random.normal(k_glob, (num_graphs, d_glob), jnp.float32)

    params = init_params(k_params, d_in, d_hidden, d_out, d_glob)

    out = gnn_forward(params, x, edge_index, edge_attr, batch_idx, glob_vecs,
                      num_graphs, tile=256)
    out = jax.block_until_ready(out)

    ref = _reference_forward(params, x, edge_index, batch_idx, glob_vecs, num_graphs)
    assert out.shape == (num_graphs, 1)
    # bf16 MXU inputs with f32 accumulation, outputs pass through sigmoid:
    # compare against the f32 reference at bf16-appropriate tolerance.
    assert jnp.allclose(out, ref, atol=1e-2, rtol=1e-2), (out, ref)

    print("KERNEL_OK")
</pallas_src>

<mosaic_0001>
module attributes {stable_mosaic.version = 11 : i64} {
  func.func @_gcn_pool_kernel(%arg0: i32, %arg1: memref<256x768xbf16, #tpu.memory_space<vmem>>, %arg2: memref<768x128xbf16, #tpu.memory_space<vmem>>, %arg3: memref<128x128xbf16, #tpu.memory_space<vmem>>, %arg4: memref<8x128xf32, #tpu.memory_space<vmem>>, %arg5: memref<8x256xbf16, #tpu.memory_space<vmem>>, %arg6: memref<1x8x128xf32, #tpu.memory_space<vmem>>) attributes {dimension_semantics = [#tpu.dimension_semantics<parallel>], iteration_bounds = array<i64: 3>, scalar_prefetch = 0 : i64, scratch_operands = 0 : i64, tpu.core_type = #tpu.core_type<tc>, window_params = [{transform_indices = @transform_0, window_bounds = array<i64: 256, 768>}, {pipeline_mode = #tpu.pipeline_mode<synchronous>, transform_indices = @transform_1, window_bounds = array<i64: 768, 128>}, {pipeline_mode = #tpu.pipeline_mode<synchronous>, transform_indices = @transform_2, window_bounds = array<i64: 128, 128>}, {pipeline_mode = #tpu.pipeline_mode<synchronous>, transform_indices = @transform_3, window_bounds = array<i64: 8, 128>}, {transform_indices = @transform_4, window_bounds = array<i64: 8, 256>}, {transform_indices = @transform_5, window_bounds = array<i64: 1, 8, 128>}]} {
    %c0 = arith.constant 0 : index
    %c0_0 = arith.constant 0 : index
    %0 = vector.load %arg1[%c0, %c0_0] : memref<256x768xbf16, #tpu.memory_space<vmem>>, vector<256x768xbf16>
    %c0_1 = arith.constant 0 : index
    %c0_2 = arith.constant 0 : index
    %1 = vector.load %arg2[%c0_1, %c0_2] : memref<768x128xbf16, #tpu.memory_space<vmem>>, vector<768x128xbf16>
    %cst = arith.constant dense<0.000000e+00> : vector<256x128xf32>
    %2 = tpu.matmul %0, %1, %cst {dimension_numbers = #tpu.dot_dimension_numbers<[1], [0], [0], [1], [0, 0, 1, 1], [], []>} : vector<256x768xbf16>, vector<768x128xbf16>, vector<256x128xf32> -> vector<256x128xf32>
    %c0_3 = arith.constant 0 : index
    %c0_4 = arith.constant 0 : index
    %3 = vector.load %arg4[%c0_3, %c0_4] : memref<8x128xf32, #tpu.memory_space<vmem>>, vector<1x128xf32>
    %4 = vector.broadcast %3 : vector<1x128xf32> to vector<256x128xf32>
    %5 = arith.addf %2, %4 : vector<256x128xf32>
    %cst_5 = arith.constant 0.000000e+00 : f32
    %6 = vector.broadcast %cst_5 : f32 to vector<256x128xf32>
    %7 = arith.maximumf %5, %6 : vector<256x128xf32>
    %8 = arith.truncf %7 : vector<256x128xf32> to vector<256x128xbf16>
    %c0_6 = arith.constant 0 : index
    %c0_7 = arith.constant 0 : index
    %9 = vector.load %arg3[%c0_6, %c0_7] : memref<128x128xbf16, #tpu.memory_space<vmem>>, vector<128x128xbf16>
    %cst_8 = arith.constant dense<0.000000e+00> : vector<256x128xf32>
    %10 = tpu.matmul %8, %9, %cst_8 {dimension_numbers = #tpu.dot_dimension_numbers<[1], [0], [0], [1], [0, 0, 1, 1], [], []>} : vector<256x128xbf16>, vector<128x128xbf16>, vector<256x128xf32> -> vector<256x128xf32>
    %c0_9 = arith.constant 0 : index
    %c0_10 = arith.constant 0 : index
    %11 = vector.load %arg5[%c0_9, %c0_10] : memref<8x256xbf16, #tpu.memory_space<vmem>>, vector<8x256xbf16>
    %12 = arith.truncf %10 : vector<256x128xf32> to vector<256x128xbf16>
    %cst_11 = arith.constant dense<0.000000e+00> : vector<8x128xf32>
    %13 = tpu.matmul %11, %12, %cst_11 {dimension_numbers = #tpu.dot_dimension_numbers<[1], [0], [0], [1], [0, 0, 1, 1], [], []>} : vector<8x256xbf16>, vector<256x128xbf16>, vector<8x128xf32> -> vector<8x128xf32>
    %c0_12 = arith.constant 0 : index
    %c0_13 = arith.constant 0 : index
    %c0_14 = arith.constant 0 : index
    %14 = vector.load %arg6[%c0_12, %c0_13, %c0_14] : memref<1x8x128xf32, #tpu.memory_space<vmem>>, vector<1x8x128xf32>
    %15 = vector.shape_cast %14 : vector<1x8x128xf32> to vector<8x128xf32>
    %16 = vector.shape_cast %13 : vector<8x128xf32> to vector<1x8x128xf32>
    tpu.vector_store %arg6[%c0_12, %c0_13, %c0_14], %16 {strides = array<i32>} : memref<1x8x128xf32, #tpu.memory_space<vmem>>, vector<1x8x128xf32>,
    return
  }
  func.func @transform_0(%arg0: i32) -> (i32, i32) {
    %c0_i32 = arith.constant 0 : i32
    %c0_i32_0 = arith.constant 0 : i32
    return %arg0, %c0_i32 : i32, i32
  }
  func.func @transform_1(%arg0: i32) -> (i32, i32) {
    %c0_i32 = arith.constant 0 : i32
    %c0_i32_0 = arith.constant 0 : i32
    %c0_i32_1 = arith.constant 0 : i32
    return %c0_i32, %c0_i32_0 : i32, i32
  }
  func.func @transform_2(%arg0: i32) -> (i32, i32) {
    %c0_i32 = arith.constant 0 : i32
    %c0_i32_0 = arith.constant 0 : i32
    %c0_i32_1 = arith.constant 0 : i32
    return %c0_i32, %c0_i32_0 : i32, i32
  }
  func.func @transform_3(%arg0: i32) -> (i32, i32) {
    %c0_i32 = arith.constant 0 : i32
    %c0_i32_0 = arith.constant 0 : i32
    %c0_i32_1 = arith.constant 0 : i32
    return %c0_i32, %c0_i32_0 : i32, i32
  }
  func.func @transform_4(%arg0: i32) -> (i32, i32) {
    %c0_i32 = arith.constant 0 : i32
    %c0_i32_0 = arith.constant 0 : i32
    return %c0_i32, %arg0 : i32, i32
  }
  func.func @transform_5(%arg0: i32) -> (i32, i32, i32) {
    %c0_i32 = arith.constant 0 : i32
    %c0_i32_0 = arith.constant 0 : i32
    %c0_i32_1 = arith.constant 0 : i32
    return %arg0, %c0_i32, %c0_i32_0 : i32, i32, i32
  }
}

</mosaic_0001>

<bundles_post_ra>
// kernel: tpu_custom_call.1
= control target key start
LH: loop header
LB: loop body
LE: loop exit
PB: predicated region body
PF: predicated region fallthrough
CT: control target
= control target key end

     0   :  { %s4095_s0 = inlined_call_operand.hbm [shape: bf16[768,768], index: 0, kind: input, shape index: {}]   ;;  %s4096_s1 = inlined_call_operand.hbm [shape: bf16[768,128], index: 1, kind: input, shape index: {}]   ;;  %s4097_s2 = inlined_call_operand.hbm [shape: bf16[128,128], index: 2, kind: input, shape index: {}]   ;;  %s4098_s3 = inlined_call_operand.hbm [shape: f32[8,128], index: 3, kind: input, shape index: {}]   ;;  %s4099_s4 = inlined_call_operand.hbm [shape: bf16[8,768], index: 4, kind: input, shape index: {}]   ;;  %s4100_s5 = inlined_call_operand.hbm [shape: f32[3,8,128], index: 5, kind: output, shape index: {}]  }
   0x1   :  { %4107 = sst [smem:[#allocation25_spill]] %s4095_s0 }
   0x2   :  { %4108 = sst [smem:[#allocation26_spill]] %s4096_s1 }
   0x3   :  { %4109 = sst [smem:[#allocation27_spill]] %s4097_s2 }
   0x4   :  { %4110 = sst [smem:[#allocation28_spill]] %s4098_s3 }
   0x5   :  { %10 = vsyncpa [#allocation3], 0 }
   0x6   :  { %12 = vsyncpa [#allocation3 + $0x1], 0 }
   0x7   :  { %13 = vsyncpa [#allocation6], 0 }
   0x8   :  { %14 = vsyncpa [#allocation9], 0 }
   0x9   :  { %15 = vsyncpa [#allocation4], 0 }
   0xa   :  { %17 = vsyncpa [#allocation4 + $0x1], 0  ;;  %s3380_s18 = smov 0   ;;  %s3382_s19 = smov 0  }
   0xb   :  { %s3384_s20 = smov 0   ;;  %s3386_s21 = smov 0  }
   0xc LB: > { %s3401_s22 = sadd.s32 4294967295, %s3341_s21   ;;  %s2216_s23 = sadd.s32 4294967294, %s3341_s21   ;;  %s3341_s21 = sphi %s3386_s21, %s4142_s21   ;;  %s3337_s20 = sphi %s3384_s20, %s4146_s20   ;;  %s3333_s19 = sphi %s3382_s19, %s4145_s19   ;;  %s3329_s18 = sphi %s3380_s18, %s4144_s18  }
   0xd   : > { %p43_p0 = scmp.ne.s32.totalorder %s3333_s19, %s3329_s18  ;;  %p4106_p1 = scmp.eq.s32.totalorder %s3401_s22, 0 }
   0xe   : > { %p156_p2 = scmp.eq.s32.totalorder %s3401_s22, 2  ;;  %p162_p3 = scmp.eq.s32.totalorder %s2216_s23, 2 }
   0xf   : > { %p3410_p4 = por %p4106_p1, %p43_p0  ;;  %p2217_p5 = scmp.ge.s32.totalorder %s3341_s21, 1 }
  0x10   : > { %p3415_p6 = por %p162_p3, %p43_p0  ;;  %p169_p7 = scmp.lt.s32.totalorder %s3341_s21, 4 }
  0x11   : > { %s4113_s1 = sld [smem:[#allocation26_spill]]  ;;  %s3343_s30 = smov [#allocation5]  }
  0x12   : > { %p3423_p8 = pnand %p2217_p5, %p169_p7  ;;  %s182_s6 = sshll.u32 %s3343_s30, 4  ;;  %s183_s6 = int_to_ptr.vmem [resolvable:$true] %s182_s6 }
  0x13   : > { %s3436_s8 = sadd.s32 1, %s3341_s21   ;;  %s4101_s9 = smov 64  }
  0x14   : > { %p3044_p9 = pneg %p3423_p8  ;;  %4116 = sst [smem:[#allocation17_spill]] %s3436_s8 }
  0x15   : > { %s4102_s10 = smov 4   ;;  %s27_s11 = ssub.s32 %s3341_s21, %s3436_s8 }
  0x16   : > { %p3431_p10 = pnand %p3044_p9, %p4106_p1  ;;  %s30_s12 = sadd.s32 1, %s3337_s20 }
  0x17   : > { %s180_s28 = sshll.u32 %s4113_s1, 4  ;;  %p28_p11 = scmp.eq.s32.totalorder %s27_s11, 0  ;;  %s181_s28 = int_to_ptr.hbm [resolvable:$true] %s180_s28 }
  0x18   : > { %3047 = dma.hbm_to_vmem [thread:$0]  (!%p3431_p10), %s181_s28, 6144, %s183_s6, [#allocation6], %s4101_s9, %s4101_s9, %s4102_s10  }
  0x19   : > { %p37_p12 = scmp.ne.s32.totalorder %s3337_s20, %s3333_s19  ;;  %p38_p13 = scmp.eq.s32.totalorder %s3341_s21, 0 }
  0x1a   : > { %p3068_p0 = scmp.lt.s32.totalorder %s3341_s21, 3  ;;  %s222_s15 = sand.u32 1, %s3341_s21  }
  0x1b   : > { %s3451_s13 = scalar_select %p28_p11, %s3337_s20, %s30_s12  }
  0x1c   : > { %p39_p3 = por %p38_p13, %p37_p12  ;;  %p3455_p5 = por %p156_p2, %p37_p12 }
  0x1d   : > { %4117 = sst [smem:[#allocation18_spill]] %s3451_s13  ;;  %s4103_s16 = sand.u32 1, %s3337_s20  }
  0x1e   : > { %s3023_s17 = smul.u32 768, %s4103_s16  ;;  %p3464_p7 = pnand %p3068_p0, %p39_p3 }
  0x1f   : > { %s3024_s23 = smul.u32 768, %s3341_s21  ;;  %s4120_s0 = sld [smem:[#allocation25_spill]] }
  0x20   : > { %s226_s6 = scalar_lea.vmem [#allocation2], %s3023_s17  ;;  %s4121_s2 = sld [smem:[#allocation27_spill]] }
  0x21   : > { %s235_s11 = sshll.u32 %s226_s6, 4  ;;  %s3474_s1 = scalar_lea.sflag [#allocation3], %s222_s15  ;;  %s236_s11 = int_to_ptr.vmem [resolvable:$true] %s235_s11 }
  0x22   : > { %p3147_p9 = pneg %p3464_p7 }
  0x25   : > { %s232_s30 = scalar_lea.hbm %s4120_s0, %s3024_s23  ;;  %s3150_s27 = scalar_lea.hbm %s4120_s0, 2304 }
  0x26   : > { %s233_s12 = sshll.u32 %s232_s30, 4  ;;  %s194_s16 = sshll.u32 %s4121_s2, 4  ;;  %s234_s12 = int_to_ptr.hbm [resolvable:$true] %s233_s12  ;;  %s195_s16 = int_to_ptr.hbm [resolvable:$true] %s194_s16 }
  0x27   : > { %s3143_s13 = sshra.s32 %s234_s12, 4  ;;  %s3144_s13 = int_to_ptr.hbm [resolvable:$true] %s3143_s13 }
  0x28   : > { %s3145_s8 = scalar_lea.hbm %s3144_s13, 768  ;;  %p3151_p13 = scmp.lt.s32.totalorder %s3144_s13, %s4120_s0 }
  0x29   : > { %p3146_p2 = scmp.ne.s32.totalorder %s3144_s13, %s3145_s8  ;;  %p3152_p0 = scmp.lt.s32.totalorder %s3150_s27, %s3145_s8 }
  0x2b   : > { %p3148_p11 = pnand %p3147_p9, %p3146_p2  ;;  %p3153_p3 = por %p3152_p0, %p3151_p13 }
  0x2d   : > { %p3149_p12 = pneg %p3148_p11 }
  0x2f   : > { %p3154_p1 = pnand %p3153_p3, %p3149_p12 }
  0x31   : > { %3157 = shalt.err (!%p3154_p1)
}
  0x32   : > { %s3346_s9 = smov 384   ;;  %s3347_s10 = smov 24  }
  0x33   : > { %3057 = dma.hbm_to_vmem [thread:$0]  (!%p3464_p7), %s234_s12, 12288, %s236_s11, %s3474_s1, %s3346_s9, %s3346_s9, %s3347_s10  }
  0x34   : > { %s3348_s15 = smov [#allocation7]   ;;  %s4122_s3 = sld [smem:[#allocation28_spill]] }
  0x35   : > { %s196_s6 = sshll.u32 %s3348_s15, 4  ;;  %s4123_s13 = smov 4   ;;  %s197_s6 = int_to_ptr.vmem [resolvable:$true] %s196_s6 }
  0x36   : > { %s4124_s27 = smov 64   ;;  %s4125_s28 = sand.u32 1, %s3337_s20  }
  0x37   : > { %3050 = dma.hbm_to_vmem [thread:$0]  (!%p3431_p10), %s195_s16, 1024, %s197_s6, [#allocation6], %s4124_s27, %s4124_s27, %s4123_s13  }
  0x38   : > { %s2225_s30 = sshll.u32 %s4125_s28, 3  ;;  %s3349_s0 = smov [#allocation8]  }
  0x39   : > { %s211_s2 = sshll.u32 %s3349_s0, 4  ;;  %s2846_s11 = sshll.u32 %s3341_s21, 3  ;;  %s212_s2 = int_to_ptr.vmem [resolvable:$true] %s211_s2 }
  0x3a   : > { %s209_s8 = sshll.u32 %s4122_s3, 4  ;;  %s254_s10 = scalar_lea.hbm %s4099_s4, %s2846_s11  ;;  %s210_s8 = int_to_ptr.hbm [resolvable:$true] %s209_s8 }
  0x3b   : > { %3053 = dma.hbm_to_vmem [thread:$0]  (!%p3431_p10), %s210_s8, 128, %s212_s2, [#allocation9]  }
  0x3c   : > { %s249_s15 = scalar_lea.vmem [#allocation10], %s2225_s30  ;;  %s256_s23 = sshll.u32 %s254_s10, 4  ;;  %s257_s23 = int_to_ptr.hbm [resolvable:$true] %s256_s23 }
  0x3d   : > { %s258_s17 = sshll.u32 %s249_s15, 4  ;;  %s3233_s3 = sshra.s32 %s257_s23, 4  ;;  %s259_s17 = int_to_ptr.vmem [resolvable:$true] %s258_s17  ;;  %s3234_s3 = int_to_ptr.hbm [resolvable:$true] %s3233_s3 }
  0x3e   : > { %s3235_s16 = scalar_lea.hbm %s3234_s3, 8  ;;  %s3240_s2 = scalar_lea.hbm %s4099_s4, 24 }
  0x3f   : > { %p3236_p1 = scmp.ne.s32.totalorder %s3234_s3, %s3235_s16  ;;  %p3241_p10 = scmp.lt.s32.totalorder %s3234_s3, %s4099_s4 }
  0x40   : > { %p3242_p12 = scmp.lt.s32.totalorder %s3240_s2, %s3235_s16 }
  0x41   : > { %p3238_p2 = pnand %p3236_p1, %p3147_p9 }
  0x42   : > { %p3243_p13 = por %p3242_p12, %p3241_p10 }
  0x43   : > { %p3239_p11 = pneg %p3238_p2 }
  0x45   : > { %p3244_p0 = pnand %p3243_p13, %p3239_p11 }
  0x47   : > { %3247 = shalt.err (!%p3244_p0)
}
  0x48   : > { %3060 = dma.hbm_to_vmem [thread:$0]  (!%p3464_p7), %s257_s23, 128, %s259_s17, %s3474_s1  }
  0x49   : > { %267 = sbr.rel (%p3423_p8) target bundleno = 1027 (0x403), region = 40 }
  0x4e   : > { %s269_s13 = sand.u32 1, %s3401_s22   ;;  %s3522_s27 = sand.u32 1, %s3333_s19  }
  0x4f   : > { %s3025_s28 = smul.u32 768, %s3522_s27  ;;  %s270_s3 = scalar_lea.sflag [#allocation3], %s269_s13 }
  0x51   : > { %s3525_s30 = scalar_lea.vmem [#allocation2], %s3025_s28 }
  0x52   : > { %3308 = dma.done.wait (%p3410_p4), %s270_s3, 12288  }
  0x53   : > { %3310 = vsyncadd (%p3410_p4), %s270_s3, 4294955008  ;;  %p4126_p7 = scmp.eq.s32.totalorder %s3401_s22, 0 }
  0x55   : > { %3312 = dma.done.wait (%p4126_p7), [#allocation6], 7168   ;;  %p4127_p8 = pmov %p4126_p7 }
  0x56   : > { %p4128_p9 = pmov %p4126_p7 }
  0x57   : > { %3314 = vsyncadd (%p4127_p8), [#allocation6], 4294960128 }
  0x58   : > { %3316 = dma.done.wait (%p4128_p9), [#allocation9], 128   ;;  %p4129_p3 = pmov %p4126_p7 }
  0x59   : > { %s2232_s1 = sshll.u32 %s3522_s27, 3 }
  0x5a   : > { %3318 = vsyncadd (%p4129_p3), [#allocation9], 4294967168  ;;  %s3542_s29 = scalar_lea.vmem [#allocation10], %s2232_s1 }
  0x5b   : > { %3320 = dma.done.wait (%p3410_p4), %s270_s3, 128  }
  0x5c   : > { %3322 = vsyncadd (%p3410_p4), %s270_s3, 4294967168  ;;  %v2950_v0 = vld [vmem:[#allocation5 + $0x38] sm:$0xff]  ;;  %v2949_v3 = vld [vmem:[#allocation5 + $0x30] sm:$0xff]  ;;  %s2843_s24 = sshll.u32 %s3401_s22, 3  ;;  %s330_s9 = scalar_lea.vmem [#allocation11], %s2232_s1 }
  0x5d   : > { %v3548_v1 = vld [vmem:[#allocation5 + $0x78] sm:$0xff]  ;;  %1295 = vmatpush.bf16.msra.mxu0 %v2950_v0  ;;  %2999 = vmatpush.bf16.msra.mxu3 %v2950_v0  ;;  %v3554_v4 = vld [vmem:[#allocation5 + $0x70] sm:$0xff]  ;;  %v2948_v6 = vld [vmem:[#allocation5 + $0x28] sm:$0xff]  ;;  %s2092_s12 = scalar_lea.hbm %s4100_s5, %s2843_s24  ;;  %s2094_s10 = sshll.u32 %s330_s9, 4  ;;  %s2095_s10 = int_to_ptr.vmem [resolvable:$true] %s2094_s10 }
  0x5e   : > { %v3550_v2 = vld [vmem:[#allocation5 + $0xb8] sm:$0xff]  ;;  %1384 = vmatpush.bf16.msra.mxu1 %v3548_v1  ;;  %v3556_v5 = vld [vmem:[#allocation5 + $0xb0] sm:$0xff]  ;;  %v2956_v7 = vld [vmem:[#allocation5 + $0x68] sm:$0xff]  ;;  %s2096_s15 = sshll.u32 %s2092_s12, 4  ;;  %s2082_s17 = scalar_lea.sflag [#allocation4], %s3522_s27  ;;  %s2097_s15 = int_to_ptr.hbm [resolvable:$true] %s2096_s15 }
  0x5f   : > { %1473 = vmatpush.bf16.msra.mxu2 %v3550_v2  ;;  %v3560_v8 = vld [vmem:[#allocation5 + $0xa8] sm:$0xff]  ;;  %v2947_v9 = vld [vmem:[#allocation5 + $0x20] sm:$0xff]  ;;  %v2946_v12 = vld [vmem:[#allocation5 + $0x18] sm:$0xff]  ;;  %s3277_s23 = sshra.s32 %s2097_s15, 4  ;;  %s3283_s7 = scalar_lea.hbm %s4100_s5, 24  ;;  %s3278_s23 = int_to_ptr.hbm [resolvable:$true] %s3277_s23 }
  0x60   : > { %v2955_v10 = vld [vmem:[#allocation5 + $0x60] sm:$0xff]  ;;  %v2954_v13 = vld [vmem:[#allocation5 + $0x58] sm:$0xff]  ;;  %v2945_v15 = vld [vmem:[#allocation5 + $0x10] sm:$0xff]  ;;  %s3279_s16 = scalar_lea.hbm %s3278_s23, 8  ;;  %p3284_p11 = scmp.lt.s32.totalorder %s3278_s23, %s4100_s5 }
  0x61   : > { %1296 = vmatpush.bf16.msra.mxu0 %v2949_v3  ;;  %3000 = vmatpush.bf16.msra.mxu3 %v2949_v3  ;;  %v3563_v11 = vld [vmem:[#allocation5 + $0xa0] sm:$0xff]  ;;  %v3566_v14 = vld [vmem:[#allocation5 + $0x98] sm:$0xff]  ;;  %v2953_v16 = vld [vmem:[#allocation5 + $0x50] sm:$0xff]  ;;  %p3280_p4 = scmp.ne.s32.totalorder %s3278_s23, %s3279_s16  ;;  %p3285_p10 = scmp.lt.s32.totalorder %s3283_s7, %s3279_s16 }
  0x62   : > { %1385 = vmatpush.bf16.msra.mxu1 %v3554_v4  ;;  %v3569_v17 = vld [vmem:[#allocation5 + $0x90] sm:$0xff]  ;;  %v2944_v18 = vld [vmem:[#allocation5 + $0x8] sm:$0xff]  ;;  %v2943_v21 = vld [vmem:[#allocation5] sm:$0xff] }
  0x63   : > { %1474 = vmatpush.bf16.msra.mxu2 %v3556_v5  ;;  %v2952_v19 = vld [vmem:[#allocation5 + $0x48] sm:$0xff]  ;;  %v2951_v22 = vld [vmem:[#allocation5 + $0x40] sm:$0xff]  ;;  %v2850_v25 = vld [vmem:[%s3525_s30 + $0x14] sm:$0xf0]  ;;  %p3281_p1 = pnand %p3280_p4, %p3455_p5  ;;  %p3286_p12 = por %p3285_p10, %p3284_p11 }
  0x64   : > { %v3572_v20 = vld [vmem:[#allocation5 + $0x88] sm:$0xff]  ;;  %v3574_v23 = vld [vmem:[#allocation5 + $0x80] sm:$0xff]  ;;  %v2548_v26 = vld [vmem:[%s3525_s30 + $0x270] sm:$0xf] }
  0x65   : > { %1297 = vmatpush.bf16.msra.mxu0 %v2948_v6  ;;  %3001 = vmatpush.bf16.msra.mxu3 %v2948_v6  ;;  %v2236_v24 = vld [vmem:[%s3525_s30] sm:$0xf]  ;;  %v2928_v27 = vld [vmem:[%s3525_s30 + $0x284] sm:$0xf0]  ;;  %v2847_v28 = vld [vmem:[%s3525_s30 + $0x4] sm:$0xf]  ;;  %p3282_p2 = pneg %p3281_p1 }
  0x66   : > { %1386 = vmatpush.bf16.msra.mxu1 %v2956_v7  ;;  %v2238_v29 = vld [vmem:[%s3525_s30 + $0x18] sm:$0xf0]  ;;  %v2244_v30 = vld [vmem:[%s3525_s30 + $0x8] sm:$0xf]  ;;  %v2851_v31 = vld [vmem:[%s3525_s30 + $0x1c] sm:$0xf0]  ;;  %v2237_v32 = vor.u32 %v2850_v25, %v2236_v24  ;;  %v2549_v33 = vor.u32 %v2928_v27, %v2548_v26 }
  0x67   : > { %1475 = vmatpush.bf16.msra.mxu2 %v3560_v8  ;;  %v2241_v34 = vor.u32 %v2847_v28, %v2238_v29  ;;  %v2245_v35 = vor.u32 %v2851_v31, %v2244_v30  ;;  %v2260_v36 = vld [vmem:[%s3525_s30 + $0x30] sm:$0xf]  ;;  %v2856_v37 = vld [vmem:[%s3525_s30 + $0x44] sm:$0xf0]  ;;  %v2572_v38 = vld [vmem:[%s3525_s30 + $0x2a0] sm:$0xf]  ;;  %p3287_p13 = pnand %p3286_p12, %p3282_p2 }
  0x68   : > { %v2934_v39 = vld [vmem:[%s3525_s30 + $0x2b4] sm:$0xf0]  ;;  %v2853_v40 = vld [vmem:[%s3525_s30 + $0x34] sm:$0xf]  ;;  %v2262_v41 = vld [vmem:[%s3525_s30 + $0x48] sm:$0xf0]  ;;  %v2261_v44 = vor.u32 %v2856_v37, %v2260_v36 }
  0x69   : > { %1298 = vmatpush.bf16.msra.mxu0 %v2947_v9  ;;  %3002 = vmatpush.bf16.msra.mxu3 %v2947_v9  ;;  %v2268_v42 = vld [vmem:[%s3525_s30 + $0x38] sm:$0xf]  ;;  %v2857_v43 = vld [vmem:[%s3525_s30 + $0x4c] sm:$0xf0]  ;;  %v2573_v45 = vor.u32 %v2934_v39, %v2572_v38  ;;  %v2265_v46 = vor.u32 %v2853_v40, %v2262_v41  ;;  %v2284_v48 = vld [vmem:[%s3525_s30 + $0x60] sm:$0xf] }
  0x6a   : > { %1387 = vmatpush.bf16.msra.mxu1 %v2955_v10  ;;  %v2269_v47 = vor.u32 %v2857_v43, %v2268_v42  ;;  %v2862_v49 = vld [vmem:[%s3525_s30 + $0x74] sm:$0xf0]  ;;  %v2596_v50 = vld [vmem:[%s3525_s30 + $0x2d0] sm:$0xf]  ;;  %v2940_v51 = vld [vmem:[%s3525_s30 + $0x2e4] sm:$0xf0] }
  0x6b   : > { %1476 = vmatpush.bf16.msra.mxu2 %v3563_v11  ;;  %v2859_v52 = vld [vmem:[%s3525_s30 + $0x64] sm:$0xf]  ;;  %v2286_v53 = vld [vmem:[%s3525_s30 + $0x78] sm:$0xf0]  ;;  %v2292_v54 = vld [vmem:[%s3525_s30 + $0x68] sm:$0xf]  ;;  %v2285_v56 = vor.u32 %v2862_v49, %v2284_v48  ;;  %v2597_v57 = vor.u32 %v2940_v51, %v2596_v50 }
  0x6c   : > { %v2863_v55 = vld [vmem:[%s3525_s30 + $0x7c] sm:$0xf0]  ;;  %v2289_v58 = vor.u32 %v2859_v52, %v2286_v53  ;;  %v2308_v60 = vld [vmem:[%s3525_s30 + $0x90] sm:$0xf]  ;;  %v2868_v61 = vld [vmem:[%s3525_s30 + $0xa4] sm:$0xf0] }
  0x6d   : > { %1299 = vmatpush.bf16.msra.mxu0 %v2946_v12  ;;  %3003 = vmatpush.bf16.msra.mxu3 %v2946_v12  ;;  %v2293_v59 = vor.u32 %v2863_v55, %v2292_v54  ;;  %v2865_v62 = vld [vmem:[%s3525_s30 + $0x94] sm:$0xf]  ;;  %v2550_v0 = vld [vmem:[%s3525_s30 + $0x288] sm:$0xf0]  ;;  %v2869_v3 = vld [vmem:[%s3525_s30 + $0xac] sm:$0xf0] }
  0x6e   : > { %1388 = vmatpush.bf16.msra.mxu1 %v2954_v13  ;;  %v2925_v63 = vld [vmem:[%s3525_s30 + $0x274] sm:$0xf]  ;;  %v2874_v9 = vld [vmem:[%s3525_s30 + $0xd4] sm:$0xf0]  ;;  %v2574_v12 = vld [vmem:[%s3525_s30 + $0x2b8] sm:$0xf0] }
  0x6f   : > { %1477 = vmatpush.bf16.msra.mxu2 %v3566_v14  ;;  %v2937_v24 = vld [vmem:[%s3525_s30 + $0x2d4] sm:$0xf]  ;;  %v2598_v25 = vld [vmem:[%s3525_s30 + $0x2e8] sm:$0xf0]  ;;  %v2364_v27 = vld [vmem:[%s3525_s30 + $0xf8] sm:$0xf] }
  0x70   : > { %v2358_v26 = vld [vmem:[%s3525_s30 + $0x108] sm:$0xf0]  ;;  %v2881_v28 = vld [vmem:[%s3525_s30 + $0x10c] sm:$0xf0]  ;;  %v2601_v30 = vor.u32 %v2937_v24, %v2598_v25  ;;  %v2380_v37 = vld [vmem:[%s3525_s30 + $0x120] sm:$0xf] }
  0x71   : > { %1300 = vmatpush.bf16.msra.mxu0 %v2945_v15  ;;  %3004 = vmatpush.bf16.msra.mxu3 %v2945_v15  ;;  %v2875_v15 = vld [vmem:[%s3525_s30 + $0xdc] sm:$0xf0]  ;;  %v2365_v31 = vor.u32 %v2881_v28, %v2364_v27  ;;  %v2972_v36 = vld [vmem:[#allocation5 + $0xe8] sm:$0xff]  ;;  %v2886_v38 = vld [vmem:[%s3525_s30 + $0x134] sm:$0xf0] }
  0x72   : > { %1389 = vmatpush.bf16.msra.mxu1 %v2953_v16  ;;  %v2883_v39 = vld [vmem:[%s3525_s30 + $0x124] sm:$0xf]  ;;  %v2556_v40 = vld [vmem:[%s3525_s30 + $0x278] sm:$0xf]  ;;  %v2929_v41 = vld [vmem:[%s3525_s30 + $0x28c] sm:$0xf0] }
  0x73   : > { %1478 = vmatpush.bf16.msra.mxu2 %v3569_v17  ;;  %v2382_v42 = vld [vmem:[%s3525_s30 + $0x138] sm:$0xf0]  ;;  %v2388_v43 = vld [vmem:[%s3525_s30 + $0x128] sm:$0xf]  ;;  %v2969_v51 = vld [vmem:[#allocation5 + $0xd0] sm:$0xff] }
  0x74   : > { %v2385_v48 = vor.u32 %v2883_v39, %v2382_v42  ;;  %v2970_v50 = vld [vmem:[#allocation5 + $0xd8] sm:$0xff]  ;;  %v2404_v52 = vld [vmem:[%s3525_s30 + $0x150] sm:$0xf]  ;;  %v2892_v53 = vld [vmem:[%s3525_s30 + $0x164] sm:$0xf0] }
  0x75   : > { %1301 = vmatpush.bf16.msra.mxu0 %v2944_v18  ;;  %3005 = vmatpush.bf16.msra.mxu3 %v2944_v18  ;;  %v2968_v54 = vld [vmem:[#allocation5 + $0xc8] sm:$0xff]  ;;  %v2889_v55 = vld [vmem:[%s3525_s30 + $0x154] sm:$0xf]  ;;  %v2452_v28 = vld [vmem:[%s3525_s30 + $0x1b0] sm:$0xf] }
  0x76   : > { %1390 = vmatpush.bf16.msra.mxu1 %v2952_v19 }
  0x77   : > { %1479 = vmatpush.bf16.msra.mxu2 %v3572_v20 }
  0x79   : > { %1302 = vmatpush.bf16.msra.mxu0 %v2943_v21  ;;  %3006 = vmatpush.bf16.msra.mxu3 %v2943_v21  ;;  %v2880_v21 = vld [vmem:[%s3525_s30 + $0x104] sm:$0xf0] }
  0x7a   : > { %1391 = vmatpush.bf16.msra.mxu1 %v2951_v22 }
  0x7b   : > { %1480 = vmatpush.bf16.msra.mxu2 %v3574_v23 }
  0x7c   : > { %1303 = vmatmul.bf16.vlgmr.msra.gmra.mxu0 %v2237_v32  ;;  %1368 = vmatmul.bf16.vlgmr.msra.gmra.mxu3 %v2549_v33  ;;  %v2974_v32 = vld [vmem:[#allocation5 + $0xf8] sm:$0xff] }
  0x7d   : > { %3007 = vmatpush.bf16.msrb.mxu3 %v3548_v1  ;;  %1392 = vmatmul.bf16.vlgmr.msra.gmra.mxu1 %v2241_v34  ;;  %v2310_v1 = vld [vmem:[%s3525_s30 + $0xa8] sm:$0xf0]  ;;  %v2982_v33 = vld [vmem:[#allocation5 + $0x138] sm:$0xff] }
  0x7e   : > { %1481 = vmatmul.bf16.vlgmr.msra.gmra.mxu2 %v2245_v35  ;;  %v2313_v6 = vor.u32 %v2865_v62, %v2310_v1  ;;  %v2990_v34 = vld [vmem:[#allocation5 + $0x178] sm:$0xff]  ;;  %v2973_v35 = vld [vmem:[#allocation5 + $0xf0] sm:$0xff]  ;;  %1651 = vmatpush.bf16.msrb.mxu0 %v2982_v33  ;;  %v2848_v33 = vld [vmem:[%s3525_s30 + $0xc] sm:$0xf] }
  0x7f   : > { %1740 = vmatpush.bf16.msrb.mxu1 %v2990_v34  ;;  %v2246_v34 = vld [vmem:[%s3525_s30 + $0x20] sm:$0xf0] }
  0x81   : > { %3008 = vmatpush.bf16.msrb.mxu3 %v3554_v4  ;;  %v2309_v4 = vor.u32 %v2868_v61, %v2308_v60  ;;  %v2893_v60 = vld [vmem:[%s3525_s30 + $0x16c] sm:$0xf0]  ;;  %v2405_v61 = vor.u32 %v2892_v53, %v2404_v52 }
  0x85   : > { %3009 = vmatpush.bf16.msrb.mxu3 %v2956_v7 }
  0x89   : > { %3010 = vmatpush.bf16.msrb.mxu3 %v2955_v10  ;;  %v2871_v10 = vld [vmem:[%s3525_s30 + $0xc4] sm:$0xf] }
  0x8c   : > { %1308 = vmatmul.bf16.gmra.mxu0 %v2261_v44  ;;  %1373 = vmatmul.bf16.gmra.mxu3 %v2573_v45  ;;  %v2887_v44 = vld [vmem:[%s3525_s30 + $0x13c] sm:$0xf0]  ;;  %v2381_v45 = vor.u32 %v2886_v38, %v2380_v37  ;;  %v2905_v37 = vld [vmem:[%s3525_s30 + $0x1cc] sm:$0xf0] }
  0x8d   : > { %3011 = vmatpush.bf16.msrb.mxu3 %v2954_v13  ;;  %1397 = vmatmul.bf16.gmra.mxu1 %v2265_v46  ;;  %v2334_v13 = vld [vmem:[%s3525_s30 + $0xd8] sm:$0xf0]  ;;  %v2557_v46 = vor.u32 %v2929_v41, %v2556_v40  ;;  %v2389_v49 = vor.u32 %v2887_v44, %v2388_v43  ;;  %v2249_v41 = vor.u32 %v2848_v33, %v2246_v34  ;;  %v2502_v33 = vld [vmem:[%s3525_s30 + $0x228] sm:$0xf0]  ;;  %v2508_v34 = vld [vmem:[%s3525_s30 + $0x218] sm:$0xf] }
  0x8e   : > { %1486 = vmatmul.bf16.gmra.mxu2 %v2269_v47  ;;  %v2337_v18 = vor.u32 %v2871_v10, %v2334_v13  ;;  %v2971_v47 = vld [vmem:[#allocation5 + $0xe0] sm:$0xff]  ;;  %v2430_v10 = vld [vmem:[%s3525_s30 + $0x198] sm:$0xf0] }
  0x91   : > { %3012 = vmatpush.bf16.msrb.mxu3 %v2953_v16 }
  0x95   : > { %3013 = vmatpush.bf16.msrb.mxu3 %v2952_v19 }
  0x99   : > { %3014 = vmatpush.bf16.msrb.mxu3 %v2951_v22  ;;  %v2877_v22 = vld [vmem:[%s3525_s30 + $0xf4] sm:$0xf] }
  0x9c   : > { %1313 = vmatmul.bf16.gmra.mxu0 %v2285_v56  ;;  %1378 = vmatmul.bf16.gmra.mxu3 %v2597_v57  ;;  %v2580_v56 = vld [vmem:[%s3525_s30 + $0x2a8] sm:$0xf]  ;;  %v2935_v57 = vld [vmem:[%s3525_s30 + $0x2bc] sm:$0xf0] }
  0x9d   : > { %3015 = vmatpush.bf16.msra.mxu3 %v3550_v2  ;;  %1402 = vmatmul.bf16.gmra.mxu1 %v2289_v58  ;;  %v2316_v2 = vld [vmem:[%s3525_s30 + $0x98] sm:$0xf]  ;;  %v2406_v58 = vld [vmem:[%s3525_s30 + $0x168] sm:$0xf0]  ;;  %v2581_v62 = vor.u32 %v2935_v57, %v2580_v56  ;;  %v2476_v56 = vld [vmem:[%s3525_s30 + $0x1e0] sm:$0xf] }
  0x9e   : > { %1491 = vmatmul.bf16.gmra.mxu2 %v2293_v59  ;;  %v2317_v7 = vor.u32 %v2869_v3, %v2316_v2  ;;  %v2412_v59 = vld [vmem:[%s3525_s30 + $0x158] sm:$0xf]  ;;  %v2981_v2 = vld [vmem:[#allocation5 + $0x130] sm:$0xff] }
  0x9f   : > { %v2413_v1 = vor.u32 %v2893_v60, %v2412_v59  ;;  %1652 = vmatpush.bf16.msrb.mxu0 %v2981_v2  ;;  %v2989_v3 = vld [vmem:[#allocation5 + $0x170] sm:$0xff]  ;;  %v2910_v57 = vld [vmem:[%s3525_s30 + $0x1f4] sm:$0xf0]  ;;  %v2854_v59 = vld [vmem:[%s3525_s30 + $0x3c] sm:$0xf] }
  0xa0   : > { %1741 = vmatpush.bf16.msrb.mxu1 %v2989_v3  ;;  %v2270_v60 = vld [vmem:[%s3525_s30 + $0x50] sm:$0xf0]  ;;  %v2477_v2 = vor.u32 %v2910_v57, %v2476_v56 }
  0xa1   : > { %3016 = vmatpush.bf16.msra.mxu3 %v3556_v5  ;;  %v2553_v5 = vor.u32 %v2925_v63, %v2550_v0  ;;  %v2967_v63 = vld [vmem:[#allocation5 + $0xc0] sm:$0xff]  ;;  %v2409_v0 = vor.u32 %v2889_v55, %v2406_v58  ;;  %v2273_v3 = vor.u32 %v2854_v59, %v2270_v60 }
  0xa2   : > { %v2907_v58 = vld [vmem:[%s3525_s30 + $0x1e4] sm:$0xf] }
  0xa5   : > { %3017 = vmatpush.bf16.msra.mxu3 %v3560_v8  ;;  %v2332_v8 = vld [vmem:[%s3525_s30 + $0xc0] sm:$0xf] }
  0xa6   : > { %v2333_v16 = vor.u32 %v2874_v9, %v2332_v8  ;;  %v2604_v8 = vld [vmem:[%s3525_s30 + $0x2d8] sm:$0xf]  ;;  %v2941_v9 = vld [vmem:[%s3525_s30 + $0x2ec] sm:$0xf0] }
  0xa9   : > { %3018 = vmatpush.bf16.msra.mxu3 %v3563_v11  ;;  %v2931_v11 = vld [vmem:[%s3525_s30 + $0x2a4] sm:$0xf] }
  0xac   : > { %1318 = vmatmul.bf16.gmra.mxu0 %v2309_v4  ;;  %1457 = vmatmul.bf16.vlgmr.msrb.gmra.mxu3 %v2553_v5  ;;  %v3652_v4 = vld [vmem:[#allocation8] ss:$0 sm:$0xff] }
  0xad   : > { %3019 = vmatpush.bf16.msra.mxu3 %v3566_v14  ;;  %1407 = vmatmul.bf16.gmra.mxu1 %v2313_v6  ;;  %v2340_v14 = vld [vmem:[%s3525_s30 + $0xc8] sm:$0xf]  ;;  %v2428_v5 = vld [vmem:[%s3525_s30 + $0x180] sm:$0xf]  ;;  %v2898_v6 = vld [vmem:[%s3525_s30 + $0x194] sm:$0xf0] }
  0xae   : > { %1496 = vmatmul.bf16.gmra.mxu2 %v2317_v7  ;;  %v2341_v19 = vor.u32 %v2875_v15, %v2340_v14  ;;  %v2895_v7 = vld [vmem:[%s3525_s30 + $0x184] sm:$0xf]  ;;  %v2429_v13 = vor.u32 %v2898_v6, %v2428_v5  ;;  %v2605_v14 = vor.u32 %v2941_v9, %v2604_v8 }
  0xaf   : > { %v2979_v5 = vld [vmem:[#allocation5 + $0x120] sm:$0xff] }
  0xb0   : > { %v2987_v6 = vld [vmem:[#allocation5 + $0x160] sm:$0xff] }
  0xb1   : > { %3020 = vmatpush.bf16.msra.mxu3 %v3569_v17  ;;  %v2577_v17 = vor.u32 %v2931_v11, %v2574_v12  ;;  %v2436_v11 = vld [vmem:[%s3525_s30 + $0x188] sm:$0xf]  ;;  %v2899_v12 = vld [vmem:[%s3525_s30 + $0x19c] sm:$0xf0] }
  0xb5   : > { %3021 = vmatpush.bf16.msra.mxu3 %v3572_v20  ;;  %v2356_v20 = vld [vmem:[%s3525_s30 + $0xf0] sm:$0xf] }
  0xb6   : > { %v2357_v29 = vor.u32 %v2880_v21, %v2356_v20 }
  0xb9   : > { %3022 = vmatpush.bf16.msra.mxu3 %v3574_v23  ;;  %v2361_v23 = vor.u32 %v2877_v22, %v2358_v26 }
  0xbc   : > { %1323 = vmatmul.bf16.gmra.mxu0 %v2333_v16  ;;  %1462 = vmatmul.bf16.gmra.mxu3 %v2577_v17  ;;  %v2433_v16 = vor.u32 %v2895_v7, %v2430_v10  ;;  %v2437_v17 = vor.u32 %v2899_v12, %v2436_v11 }
  0xbd   : > { %1412 = vmatmul.bf16.gmra.mxu1 %v2337_v18  ;;  %1562 = vmatpush.bf16.msrb.mxu3 %v2974_v32  ;;  %v2901_v32 = vld [vmem:[%s3525_s30 + $0x1b4] sm:$0xf] }
  0xbe   : > { %1501 = vmatmul.bf16.gmra.mxu2 %v2341_v19 }
  0xc1   : > { %1563 = vmatpush.bf16.msrb.mxu3 %v2973_v35  ;;  %v2454_v35 = vld [vmem:[%s3525_s30 + $0x1c8] sm:$0xf0] }
  0xc2   : > { %v2457_v44 = vor.u32 %v2901_v32, %v2454_v35  ;;  %v2294_v32 = vld [vmem:[%s3525_s30 + $0x80] sm:$0xf0]  ;;  %v2917_v35 = vld [vmem:[%s3525_s30 + $0x22c] sm:$0xf0] }
  0xc5   : > { %1564 = vmatpush.bf16.msrb.mxu3 %v2972_v36  ;;  %v2460_v36 = vld [vmem:[%s3525_s30 + $0x1b8] sm:$0xf] }
  0xc9   : > { %1565 = vmatpush.bf16.msrb.mxu3 %v2971_v47 }
  0xcc   : > { %1328 = vmatmul.bf16.gmra.mxu0 %v2357_v29  ;;  %1467 = vmatmul.bf16.gmra.mxu3 %v2601_v30  ;;  %v2904_v30 = vld [vmem:[%s3525_s30 + $0x1c4] sm:$0xf0] }
  0xcd   : > { %1417 = vmatmul.bf16.gmra.mxu1 %v2361_v23  ;;  %1566 = vmatpush.bf16.msrb.mxu3 %v2970_v50  ;;  %v2980_v23 = vld [vmem:[#allocation5 + $0x128] sm:$0xff]  ;;  %v2453_v40 = vor.u32 %v2904_v30, %v2452_v28 }
  0xce   : > { %1506 = vmatmul.bf16.gmra.mxu2 %v2365_v31  ;;  %v2988_v31 = vld [vmem:[#allocation5 + $0x168] sm:$0xff]  ;;  %1653 = vmatpush.bf16.msrb.mxu0 %v2980_v23  ;;  %v2913_v23 = vld [vmem:[%s3525_s30 + $0x214] sm:$0xf] }
  0xcf   : > { %1742 = vmatpush.bf16.msrb.mxu1 %v2988_v31  ;;  %v2916_v28 = vld [vmem:[%s3525_s30 + $0x224] sm:$0xf0]  ;;  %v2860_v31 = vld [vmem:[%s3525_s30 + $0x6c] sm:$0xf] }
  0xd0   : > { %v2984_v30 = vld [vmem:[#allocation5 + $0x148] sm:$0xff] }
  0xd1   : > { %1567 = vmatpush.bf16.msrb.mxu3 %v2969_v51 }
  0xd2   : > { %1654 = vmatpush.bf16.msrb.mxu0 %v2979_v5  ;;  %v2318_v5 = vld [vmem:[%s3525_s30 + $0xb0] sm:$0xf0] }
  0xd3   : > { %1743 = vmatpush.bf16.msrb.mxu1 %v2987_v6  ;;  %v2526_v6 = vld [vmem:[%s3525_s30 + $0x258] sm:$0xf0] }
  0xd5   : > { %1568 = vmatpush.bf16.msrb.mxu3 %v2968_v54 }
  0xd9   : > { %1569 = vmatpush.bf16.msrb.mxu3 %v2967_v63  ;;  %v2911_v63 = vld [vmem:[%s3525_s30 + $0x1fc] sm:$0xf0] }
  0xdc   : > { %1333 = vmatmul.bf16.gmra.mxu0 %v2381_v45  ;;  %1546 = vmatmul.bf16.vlgmr.msra.gmra.mxu3 %v2557_v46  ;;  %v2461_v45 = vor.u32 %v2905_v37, %v2460_v36 }
  0xdd   : > { %1422 = vmatmul.bf16.gmra.mxu1 %v2385_v48 }
  0xde   : > { %1511 = vmatmul.bf16.gmra.mxu2 %v2389_v49 }
  0xec   : > { %1338 = vmatmul.bf16.gmra.mxu0 %v2405_v61  ;;  %1551 = vmatmul.bf16.gmra.mxu3 %v2581_v62  ;;  %v2478_v61 = vld [vmem:[%s3525_s30 + $0x1f8] sm:$0xf0]  ;;  %v2484_v62 = vld [vmem:[%s3525_s30 + $0x1e8] sm:$0xf] }
  0xed   : > { %1427 = vmatmul.bf16.gmra.mxu1 %v2409_v0  ;;  %v2481_v8 = vor.u32 %v2907_v58, %v2478_v61  ;;  %v2485_v9 = vor.u32 %v2911_v63, %v2484_v62  ;;  %v2524_v62 = vld [vmem:[%s3525_s30 + $0x240] sm:$0xf]  ;;  %v2922_v63 = vld [vmem:[%s3525_s30 + $0x254] sm:$0xf0] }
  0xee   : > { %1516 = vmatmul.bf16.gmra.mxu2 %v2413_v1 }
  0xf9   : > { %v1304_v15 = vpop.f32.mrf.mxu0 }
  0xfa   : > { %v1305_v18 = vadd.f32 %v3652_v4, %v1304_v15  ;;  %v1393_v19 = vpop.f32.mrf.mxu1 }
  0xfc   : > { %v1394_v20 = vadd.f32 %v1393_v19, %v1305_v18  ;;  %1343 = vmatmul.bf16.gmra.mxu0 %v2429_v13  ;;  %1556 = vmatmul.bf16.gmra.mxu3 %v2605_v14  ;;  %v2978_v13 = vld [vmem:[#allocation5 + $0x118] sm:$0xff]  ;;  %v2985_v18 = vld [vmem:[#allocation5 + $0x150] sm:$0xff] }
  0xfd   : > { %1432 = vmatmul.bf16.gmra.mxu1 %v2433_v16  ;;  %v2986_v14 = vld [vmem:[#allocation5 + $0x158] sm:$0xff]  ;;  %1655 = vmatpush.bf16.msrb.mxu0 %v2978_v13 }
  0xfe   : > { %1521 = vmatmul.bf16.gmra.mxu2 %v2437_v17  ;;  %1744 = vmatpush.bf16.msrb.mxu1 %v2986_v14  ;;  %v2977_v17 = vld [vmem:[#allocation5 + $0x110] sm:$0xff] }
  0xff   : > { %v3663_v21 = vpop.f32.mrf.mxu3 }
 0x101   : > { %v1482_v22 = vpop.f32.mrf.mxu2  ;;  %v1306_v25 = vpop.f32.mrf.mxu0  ;;  %1656 = vmatpush.bf16.msrb.mxu0 %v2977_v17 }
 0x102   : > { %v3665_v24 = vadd.f32 %v1482_v22, %v1394_v20  ;;  %v1307_v26 = vadd.f32 %v3652_v4, %v1306_v25  ;;  %v1395_v27 = vpop.f32.mrf.mxu1  ;;  %1745 = vmatpush.bf16.msrb.mxu1 %v2985_v18 }
 0x104   : > { %v1396_v29 = vadd.f32 %v1395_v27, %v1307_v26  ;;  %v2500_v26 = vld [vmem:[%s3525_s30 + $0x210] sm:$0xf] }
 0x106   : > { %1746 = vmatpush.bf16.msrb.mxu1 %v2984_v30 }
 0x107   : > { %v3676_v38 = vpop.f32.mrf.mxu3 }
 0x108   : > { %v1372_v60 = vadd.f32 %v3652_v4, %v3676_v38 }
 0x109   : > { %v1484_v39 = vpop.f32.mrf.mxu2  ;;  %v1309_v43 = vpop.f32.mrf.mxu0 }
 0x10a   : > { %v3678_v42 = vadd.f32 %v1484_v39, %v1396_v29  ;;  %v1310_v46 = vadd.f32 %v3652_v4, %v1309_v43  ;;  %v1398_v47 = vpop.f32.mrf.mxu1  ;;  %v2976_v29 = vld [vmem:[#allocation5 + $0x108] sm:$0xff]  ;;  %v2501_v39 = vor.u32 %v2916_v28, %v2500_v26  ;;  %v2983_v43 = vld [vmem:[#allocation5 + $0x140] sm:$0xff] }
 0x10b   : > { %1657 = vmatpush.bf16.msrb.mxu0 %v2976_v29  ;;  %1747 = vmatpush.bf16.msrb.mxu1 %v2983_v43 }
 0x10c   : > { %v1399_v48 = vadd.f32 %v1398_v47, %v1310_v46  ;;  %1348 = vmatmul.bf16.gmra.mxu0 %v2453_v40  ;;  %1570 = vmatmul.bf16.vlgmr.msrb.gmra.mxu3 %v2249_v41  ;;  %v2297_v40 = vor.u32 %v2860_v31, %v2294_v32  ;;  %v2975_v41 = vld [vmem:[#allocation5 + $0x100] sm:$0xff]  ;;  %v2509_v46 = vor.u32 %v2917_v35, %v2508_v34  ;;  %v2252_v35 = vld [vmem:[%s3525_s30 + $0x10] sm:$0xf] }
 0x10d   : > { %1437 = vmatmul.bf16.gmra.mxu1 %v2457_v44  ;;  %v2342_v34 = vld [vmem:[%s3525_s30 + $0xe0] sm:$0xf0] }
 0x10e   : > { %1526 = vmatmul.bf16.gmra.mxu2 %v2461_v45  ;;  %v2505_v45 = vor.u32 %v2913_v23, %v2502_v33  ;;  %v2872_v33 = vld [vmem:[%s3525_s30 + $0xcc] sm:$0xf] }
 0x10f   : > { %v3681_v49 = vpop.f32.mrf.mxu3  ;;  %1658 = vmatpush.bf16.msrb.mxu0 %v2975_v41  ;;  %v2254_v41 = vld [vmem:[%s3525_s30 + $0x28] sm:$0xf0] }
 0x111   : > { %v1487_v50 = vpop.f32.mrf.mxu2  ;;  %v1311_v52 = vpop.f32.mrf.mxu0 }
 0x112   : > { %v3683_v51 = vadd.f32 %v1487_v50, %v1399_v48  ;;  %v1312_v53 = vadd.f32 %v3652_v4, %v1311_v52  ;;  %v1400_v54 = vpop.f32.mrf.mxu1  ;;  %v1370_v50 = vadd.f32 %v3652_v4, %v3663_v21 }
 0x114   : > { %v3686_v55 = vadd.f32 %v1400_v54, %v1312_v53 }
 0x117   : > { %v3696_v0 = vpop.f32.mrf.mxu3 }
 0x118   : > { %v1377_v31 = vadd.f32 %v3652_v4, %v3696_v0 }
 0x119   : > { %v3698_v1 = vpop.f32.mrf.mxu2  ;;  %v1314_v7 = vpop.f32.mrf.mxu0 }
 0x11a   : > { %v1315_v10 = vadd.f32 %v3652_v4, %v1314_v7  ;;  %v1403_v11 = vpop.f32.mrf.mxu1  ;;  %v2532_v7 = vld [vmem:[%s3525_s30 + $0x248] sm:$0xf] }
 0x11c   : > { %v1404_v12 = vadd.f32 %v1403_v11, %v1315_v10  ;;  %1353 = vmatmul.bf16.gmra.mxu0 %v2477_v2  ;;  %1575 = vmatmul.bf16.gmra.mxu3 %v2273_v3  ;;  %v2919_v2 = vld [vmem:[%s3525_s30 + $0x244] sm:$0xf]  ;;  %v2866_v3 = vld [vmem:[%s3525_s30 + $0x9c] sm:$0xf] }
 0x11d   : > { %1442 = vmatmul.bf16.gmra.mxu1 %v2481_v8  ;;  %v2923_v8 = vld [vmem:[%s3525_s30 + $0x25c] sm:$0xf0]  ;;  %v2321_v13 = vor.u32 %v2866_v3, %v2318_v5  ;;  %v2878_v5 = vld [vmem:[%s3525_s30 + $0xfc] sm:$0xf] }
 0x11e   : > { %1531 = vmatmul.bf16.gmra.mxu2 %v2485_v9  ;;  %v2533_v38 = vor.u32 %v2923_v8, %v2532_v7  ;;  %v2276_v7 = vld [vmem:[%s3525_s30 + $0x40] sm:$0xf]  ;;  %v2858_v8 = vld [vmem:[%s3525_s30 + $0x54] sm:$0xf0] }
 0x11f   : > { %v3701_v15 = vpop.f32.mrf.mxu3 }
 0x121   : > { %v1492_v16 = vpop.f32.mrf.mxu2  ;;  %v1316_v20 = vpop.f32.mrf.mxu0 }
 0x122   : > { %v3703_v19 = vadd.f32 %v1492_v16, %v1404_v12  ;;  %v1317_v22 = vadd.f32 %v3652_v4, %v1316_v20  ;;  %v1405_v25 = vpop.f32.mrf.mxu1  ;;  %v2525_v12 = vor.u32 %v2922_v63, %v2524_v62  ;;  %v2529_v16 = vor.u32 %v2919_v2, %v2526_v6  ;;  %v2366_v6 = vld [vmem:[%s3525_s30 + $0x110] sm:$0xf0] }
 0x123   : > { %v1375_v20 = vadd.f32 %v3652_v4, %v3681_v49 }
 0x124   : > { %v3707_v27 = vadd.f32 %v1405_v25, %v1317_v22 }
 0x127   : > { %v3716_v36 = vpop.f32.mrf.mxu3 }
 0x129   : > { %v3718_v37 = vpop.f32.mrf.mxu2  ;;  %v1319_v44 = vpop.f32.mrf.mxu0 }
 0x12a   : > { %v1320_v47 = vadd.f32 %v3652_v4, %v1319_v44  ;;  %v1408_v48 = vpop.f32.mrf.mxu1 }
 0x12c   : > { %v1409_v52 = vadd.f32 %v1408_v48, %v1320_v47  ;;  %1358 = vmatmul.bf16.gmra.mxu0 %v2501_v39  ;;  %1580 = vmatmul.bf16.gmra.mxu3 %v2297_v40  ;;  %v2852_v39 = vld [vmem:[%s3525_s30 + $0x24] sm:$0xf0]  ;;  %v2849_v40 = vld [vmem:[%s3525_s30 + $0x14] sm:$0xf] }
 0x12d   : > { %1447 = vmatmul.bf16.gmra.mxu1 %v2505_v45  ;;  %v2253_v47 = vor.u32 %v2852_v39, %v2252_v35 }
 0x12e   : > { %1536 = vmatmul.bf16.gmra.mxu2 %v2509_v46  ;;  %v2345_v46 = vor.u32 %v2872_v33, %v2342_v34 }
 0x12f   : > { %v1458_v53 = vpop.f32.mrf.mxu3 }
 0x130   : > { %v3723_v54 = vadd.f32 %v1458_v53, %v1370_v50  ;;  %v2257_v50 = vor.u32 %v2849_v40, %v2254_v41  ;;  %v1380_v53 = vadd.f32 %v3652_v4, %v3701_v15  ;;  %v1382_v15 = vadd.f32 %v3652_v4, %v3716_v36  ;;  %v2884_v40 = vld [vmem:[%s3525_s30 + $0x12c] sm:$0xf]  ;;  %v2390_v41 = vld [vmem:[%s3525_s30 + $0x140] sm:$0xf0] }
 0x131   : > { %v1497_v56 = vpop.f32.mrf.mxu2  ;;  %v1321_v58 = vpop.f32.mrf.mxu0 }
 0x132   : > { %v3725_v57 = vadd.f32 %v1497_v56, %v1409_v52  ;;  %v1322_v21 = vadd.f32 %v3652_v4, %v1321_v58  ;;  %v1410_v59 = vpop.f32.mrf.mxu1 }
 0x134   : > { %v3730_v61 = vadd.f32 %v1410_v59, %v1322_v21 }
 0x137   : > { %v1460_v9 = vpop.f32.mrf.mxu3 }
 0x138   : > { %v3740_v10 = vadd.f32 %v1460_v9, %v1372_v60  ;;  %v2855_v9 = vld [vmem:[%s3525_s30 + $0x44] sm:$0xf] }
 0x139   : > { %v3742_v11 = vpop.f32.mrf.mxu2  ;;  %v1324_v14 = vpop.f32.mrf.mxu0 }
 0x13a   : > { %v1325_v17 = vadd.f32 %v3652_v4, %v1324_v14  ;;  %v1413_v18 = vpop.f32.mrf.mxu1 }
 0x13c   : > { %v1414_v22 = vadd.f32 %v1413_v18, %v1325_v17  ;;  %1363 = vmatmul.bf16.gmra.mxu0 %v2525_v12  ;;  %1585 = vmatmul.bf16.gmra.mxu3 %v2321_v13  ;;  %v2278_v12 = vld [vmem:[%s3525_s30 + $0x58] sm:$0xf0]  ;;  %v2277_v17 = vor.u32 %v2858_v8, %v2276_v7 }
 0x13d   : > { %1452 = vmatmul.bf16.gmra.mxu1 %v2529_v16 }
 0x13e   : > { %1541 = vmatmul.bf16.gmra.mxu2 %v2533_v38  ;;  %v2369_v38 = vor.u32 %v2878_v5, %v2366_v6 }
 0x13f   : > { %v1463_v25 = vpop.f32.mrf.mxu3 }
 0x140   : > { %v3747_v26 = vadd.f32 %v1463_v25, %v1375_v20  ;;  %v2281_v20 = vor.u32 %v2855_v9, %v2278_v12  ;;  %v2890_v12 = vld [vmem:[%s3525_s30 + $0x15c] sm:$0xf] }
 0x141   : > { %v1502_v28 = vpop.f32.mrf.mxu2  ;;  %v1326_v30 = vpop.f32.mrf.mxu0 }
 0x142   : > { %v3749_v29 = vadd.f32 %v1502_v28, %v1414_v22  ;;  %v1327_v23 = vadd.f32 %v3652_v4, %v1326_v30  ;;  %v1415_v49 = vpop.f32.mrf.mxu1  ;;  %v2998_v28 = vld [vmem:[#allocation7 + $0x38] sm:$0xff] }
 0x143   : > { %1941 = vmatpush.bf16.msrb.mxu2 %v2998_v28 }
 0x144   : > { %v3754_v32 = vadd.f32 %v1415_v49, %v1327_v23 }
 0x147   : > { %v1465_v43 = vpop.f32.mrf.mxu3 }
 0x148   : > { %v3762_v44 = vadd.f32 %v1465_v43, %v1377_v31  ;;  %v2300_v43 = vld [vmem:[%s3525_s30 + $0x70] sm:$0xf] }
 0x149   : > { %v3764_v45 = vpop.f32.mrf.mxu2  ;;  %v1329_v48 = vpop.f32.mrf.mxu0 }
 0x14a   : > { %v1330_v52 = vadd.f32 %v3652_v4, %v1329_v48  ;;  %v1418_v0 = vpop.f32.mrf.mxu1  ;;  %v2302_v48 = vld [vmem:[%s3525_s30 + $0x88] sm:$0xf0] }
 0x14c   : > { %v1419_v56 = vadd.f32 %v1418_v0, %v1330_v52  ;;  %1590 = vmatmul.bf16.gmra.mxu3 %v2345_v46  ;;  %1659 = vmatmul.bf16.vlgmr.msrb.gmra.mxu0 %v2253_v47  ;;  %v2864_v46 = vld [vmem:[%s3525_s30 + $0x84] sm:$0xf0]  ;;  %v2861_v47 = vld [vmem:[%s3525_s30 + $0x74] sm:$0xf]  ;;  %v2393_v0 = vor.u32 %v2884_v40, %v2390_v41 }
 0x14d   : > { %1748 = vmatmul.bf16.vlgmr.msrb.gmra.mxu1 %v2257_v50 }
 0x14f   : > { %v1468_v58 = vpop.f32.mrf.mxu3 }
 0x150   : > { %v3769_v21 = vadd.f32 %v1468_v58, %v1380_v53  ;;  %v2301_v53 = vor.u32 %v2864_v46, %v2300_v43  ;;  %v2305_v58 = vor.u32 %v2861_v47, %v2302_v48 }
 0x151   : > { %v1507_v59 = vpop.f32.mrf.mxu2  ;;  %v1331_v62 = vpop.f32.mrf.mxu0 }
 0x152   : > { %v3771_v60 = vadd.f32 %v1507_v59, %v1419_v56  ;;  %v1332_v63 = vadd.f32 %v3652_v4, %v1331_v62  ;;  %v1420_v2 = vpop.f32.mrf.mxu1 }
 0x154   : > { %v3776_v3 = vadd.f32 %v1420_v2, %v1332_v63 }
 0x157   : > { %v1470_v13 = vpop.f32.mrf.mxu3 }
 0x158   : > { %v3784_v14 = vadd.f32 %v1470_v13, %v1382_v15  ;;  %v2997_v13 = vld [vmem:[#allocation7 + $0x30] sm:$0xff] }
 0x159   : > { %v3786_v16 = vpop.f32.mrf.mxu2  ;;  %v1334_v18 = vpop.f32.mrf.mxu0  ;;  %1942 = vmatpush.bf16.msrb.mxu2 %v2997_v13 }
 0x15a   : > { %v1335_v22 = vadd.f32 %v3652_v4, %v1334_v18  ;;  %v1423_v36 = vpop.f32.mrf.mxu1  ;;  %v2870_v18 = vld [vmem:[%s3525_s30 + $0xb4] sm:$0xf0] }
 0x15c   : > { %v1424_v25 = vadd.f32 %v1423_v36, %v1335_v22  ;;  %1595 = vmatmul.bf16.gmra.mxu3 %v2369_v38  ;;  %1664 = vmatmul.bf16.gmra.mxu0 %v2277_v17  ;;  %v2414_v38 = vld [vmem:[%s3525_s30 + $0x170] sm:$0xf0]  ;;  %v2324_v17 = vld [vmem:[%s3525_s30 + $0xa0] sm:$0xf]  ;;  %v2326_v22 = vld [vmem:[%s3525_s30 + $0xb8] sm:$0xf0] }
 0x15d   : > { %1753 = vmatmul.bf16.gmra.mxu1 %v2281_v20  ;;  %v2867_v20 = vld [vmem:[%s3525_s30 + $0xa4] sm:$0xf]  ;;  %v2417_v28 = vor.u32 %v2890_v12, %v2414_v38 }
 0x15f   : > { %v1547_v30 = vpop.f32.mrf.mxu3 }
 0x160   : > { %v3790_v49 = vadd.f32 %v1547_v30, %v3723_v54  ;;  %v2325_v30 = vor.u32 %v2870_v18, %v2324_v17 }
 0x161   : > { %v1512_v23 = vpop.f32.mrf.mxu2  ;;  %v1336_v33 = vpop.f32.mrf.mxu0 }
 0x162   : > { %4130 = vst [vmem:[#allocation19_spill] sm:$0xff] %v3790_v49  ;;  %v3792_v31 = vadd.f32 %v1512_v23, %v1424_v25  ;;  %v1337_v34 = vadd.f32 %v3652_v4, %v1336_v33  ;;  %v1425_v35 = vpop.f32.mrf.mxu1  ;;  %v2329_v33 = vor.u32 %v2867_v20, %v2326_v22 }
 0x164   : > { %v3795_v39 = vadd.f32 %v1425_v35, %v1337_v34 }
 0x167   : > { %v1549_v50 = vpop.f32.mrf.mxu3 }
 0x168   : > { %v3806_v54 = vadd.f32 %v1549_v50, %v3740_v10 }
 0x169   : > { %v3803_v52 = vpop.f32.mrf.mxu2  ;;  %v1339_v56 = vpop.f32.mrf.mxu0 }
 0x16a   : > { %4131 = vst [vmem:[#allocation20_spill] sm:$0xff] %v3806_v54  ;;  %v1340_v59 = vadd.f32 %v3652_v4, %v1339_v56  ;;  %v1428_v62 = vpop.f32.mrf.mxu1  ;;  %v2438_v56 = vld [vmem:[%s3525_s30 + $0x1a0] sm:$0xf0] }
 0x16c   : > { %v1429_v63 = vadd.f32 %v1428_v62, %v1340_v59  ;;  %1600 = vmatmul.bf16.gmra.mxu3 %v2393_v0  ;;  %1669 = vmatmul.bf16.gmra.mxu0 %v2301_v53  ;;  %v2896_v53 = vld [vmem:[%s3525_s30 + $0x18c] sm:$0xf]  ;;  %v2876_v59 = vld [vmem:[%s3525_s30 + $0xe4] sm:$0xf0]  ;;  %v2873_v62 = vld [vmem:[%s3525_s30 + $0xd4] sm:$0xf] }
 0x16d   : > { %1758 = vmatmul.bf16.gmra.mxu1 %v2305_v58  ;;  %v2348_v58 = vld [vmem:[%s3525_s30 + $0xd0] sm:$0xf] }
 0x16f   : > { %v1552_v2 = vpop.f32.mrf.mxu3 }
 0x170   : > { %v3810_v15 = vadd.f32 %v1552_v2, %v3747_v26 }
 0x171   : > { %v1517_v10 = vpop.f32.mrf.mxu2  ;;  %v1341_v6 = vpop.f32.mrf.mxu0 }
 0x172   : > { %4132 = vst [vmem:[#allocation21_spill] sm:$0xff] %v3810_v15  ;;  %v3812_v5 = vadd.f32 %v1517_v10, %v1429_v63  ;;  %v1342_v7 = vadd.f32 %v3652_v4, %v1341_v6  ;;  %v1430_v8 = vpop.f32.mrf.mxu1  ;;  %v2350_v63 = vld [vmem:[%s3525_s30 + $0xe8] sm:$0xf0]  ;;  %v2441_v6 = vor.u32 %v2896_v53, %v2438_v56  ;;  %v2470_v15 = vld [vmem:[%s3525_s30 + $0x1d8] sm:$0xf0] }
 0x173   : > { %v2353_v12 = vor.u32 %v2873_v62, %v2350_v63 }
 0x174   : > { %v3815_v9 = vadd.f32 %v1430_v8, %v1342_v7  ;;  %v2349_v7 = vor.u32 %v2876_v59, %v2348_v58 }
 0x177   : > { %v1554_v36 = vpop.f32.mrf.mxu3 }
 0x178   : > { %v3826_v26 = vadd.f32 %v1554_v36, %v3762_v44  ;;  %v2996_v36 = vld [vmem:[#allocation7 + $0x28] sm:$0xff] }
 0x179   : > { %v3823_v25 = vpop.f32.mrf.mxu2  ;;  %v1344_v23 = vpop.f32.mrf.mxu0  ;;  %1943 = vmatpush.bf16.msrb.mxu2 %v2996_v36  ;;  %v2888_v36 = vld [vmem:[%s3525_s30 + $0x144] sm:$0xf0] }
 0x17a   : > { %4133 = vst [vmem:[#allocation22_spill] sm:$0xff] %v3826_v26  ;;  %v1345_v34 = vadd.f32 %v3652_v4, %v1344_v23  ;;  %v1433_v35 = vpop.f32.mrf.mxu1  ;;  %v2468_v26 = vld [vmem:[%s3525_s30 + $0x1c0] sm:$0xf] }
 0x17c   : > { %v1434_v40 = vadd.f32 %v1433_v35, %v1345_v34  ;;  %1605 = vmatmul.bf16.gmra.mxu3 %v2417_v28  ;;  %1674 = vmatmul.bf16.gmra.mxu0 %v2325_v30  ;;  %v2462_v34 = vld [vmem:[%s3525_s30 + $0x1d0] sm:$0xf0]  ;;  %v2372_v35 = vld [vmem:[%s3525_s30 + $0x100] sm:$0xf] }
 0x17d   : > { %1763 = vmatmul.bf16.gmra.mxu1 %v2329_v33  ;;  %v2902_v33 = vld [vmem:[%s3525_s30 + $0x1bc] sm:$0xf] }
 0x17f   : > { %v1557_v41 = vpop.f32.mrf.mxu3 }
 0x180   : > { %v3830_v43 = vadd.f32 %v1557_v41, %v3769_v21  ;;  %v2879_v41 = vld [vmem:[%s3525_s30 + $0x104] sm:$0xf] }
 0x181   : > { %v1522_v44 = vpop.f32.mrf.mxu2  ;;  %v1346_v47 = vpop.f32.mrf.mxu0 }
 0x182   : > { %4134 = vst [vmem:[#allocation23_spill] sm:$0xff] %v3830_v43  ;;  %v3832_v46 = vadd.f32 %v1522_v44, %v1434_v40  ;;  %v1347_v48 = vadd.f32 %v3652_v4, %v1346_v47  ;;  %v1435_v50 = vpop.f32.mrf.mxu1  ;;  %v2882_v40 = vld [vmem:[%s3525_s30 + $0x114] sm:$0xf0]  ;;  %v2374_v44 = vld [vmem:[%s3525_s30 + $0x118] sm:$0xf0] }
 0x183   : > { %v2373_v53 = vor.u32 %v2882_v40, %v2372_v35  ;;  %v2377_v58 = vor.u32 %v2879_v41, %v2374_v44  ;;  %v2558_v43 = vld [vmem:[%s3525_s30 + $0x290] sm:$0xf0] }
 0x184   : > { %v3835_v0 = vadd.f32 %v1435_v50, %v1347_v48  ;;  %v2465_v50 = vor.u32 %v2902_v33, %v2462_v34  ;;  %v2995_v33 = vld [vmem:[#allocation7 + $0x20] sm:$0xff] }
 0x185   : > { %1944 = vmatpush.bf16.msrb.mxu2 %v2995_v33  ;;  %v2894_v33 = vld [vmem:[%s3525_s30 + $0x174] sm:$0xf0] }
 0x187   : > { %v1559_v2 = vpop.f32.mrf.mxu3 }
 0x188   : > { %v3846_v21 = vadd.f32 %v1559_v2, %v3784_v14 }
 0x189   : > { %v3843_v10 = vpop.f32.mrf.mxu2  ;;  %v1349_v8 = vpop.f32.mrf.mxu0 }
 0x18a   : > { %4135 = vst [vmem:[#allocation24_spill] sm:$0xff] %v3846_v21  ;;  %v1350_v13 = vadd.f32 %v3652_v4, %v1349_v8  ;;  %v1438_v38 = vpop.f32.mrf.mxu1  ;;  %v2900_v21 = vld [vmem:[%s3525_s30 + $0x1a4] sm:$0xf0] }
 0x18c   : > { %v1439_v17 = vadd.f32 %v1438_v38, %v1350_v13  ;;  %1610 = vmatmul.bf16.gmra.mxu3 %v2441_v6  ;;  %1679 = vmatmul.bf16.gmra.mxu0 %v2349_v7 }
 0x18d   : > { %1768 = vmatmul.bf16.gmra.mxu1 %v2353_v12 }
 0x18f   : > { %v3849_v18 = vpop.f32.mrf.mxu3 }
 0x191   : > { %v1527_v14 = vpop.f32.mrf.mxu2  ;;  %v1351_v22 = vpop.f32.mrf.mxu0 }
 0x192   : > { %v3851_v20 = vadd.f32 %v1527_v14, %v1439_v17  ;;  %v1352_v28 = vadd.f32 %v3652_v4, %v1351_v22  ;;  %v1440_v30 = vpop.f32.mrf.mxu1  ;;  %v2908_v17 = vld [vmem:[%s3525_s30 + $0x1ec] sm:$0xf]  ;;  %v2486_v14 = vld [vmem:[%s3525_s30 + $0x200] sm:$0xf0]  ;;  %v2396_v22 = vld [vmem:[%s3525_s30 + $0x130] sm:$0xf] }
 0x193   : > { %v2489_v40 = vor.u32 %v2908_v17, %v2486_v14  ;;  %v2397_v41 = vor.u32 %v2888_v36, %v2396_v22  ;;  %v2992_v14 = vld [vmem:[#allocation7 + $0x8] sm:$0xff]  ;;  %v2914_v36 = vld [vmem:[%s3525_s30 + $0x21c] sm:$0xf] }
 0x194   : > { %v3854_v23 = vadd.f32 %v1440_v30, %v1352_v28  ;;  %v2885_v28 = vld [vmem:[%s3525_s30 + $0x134] sm:$0xf]  ;;  %v2398_v30 = vld [vmem:[%s3525_s30 + $0x148] sm:$0xf0] }
 0x197   : > { %v3862_v47 = vpop.f32.mrf.mxu3 }
 0x199   : > { %v3864_v48 = vpop.f32.mrf.mxu2  ;;  %v1354_v56 = vpop.f32.mrf.mxu0 }
 0x19a   : > { %v1355_v59 = vadd.f32 %v3652_v4, %v1354_v56  ;;  %v1443_v62 = vpop.f32.mrf.mxu1 }
 0x19c   : > { %v1444_v63 = vadd.f32 %v1443_v62, %v1355_v59  ;;  %1615 = vmatmul.bf16.gmra.mxu3 %v2465_v50  ;;  %1684 = vmatmul.bf16.gmra.mxu0 %v2373_v53  ;;  %v2401_v50 = vor.u32 %v2885_v28, %v2398_v30  ;;  %v2993_v62 = vld [vmem:[#allocation7 + $0x10] sm:$0xff]  ;;  %v2420_v30 = vld [vmem:[%s3525_s30 + $0x160] sm:$0xf] }
 0x19d   : > { %1773 = vmatmul.bf16.gmra.mxu1 %v2377_v58  ;;  %v2994_v58 = vld [vmem:[#allocation7 + $0x18] sm:$0xff]  ;;  %v2510_v28 = vld [vmem:[%s3525_s30 + $0x230] sm:$0xf0] }
 0x19e   : > { %1945 = vmatpush.bf16.msrb.mxu2 %v2994_v58 }
 0x19f   : > { %v3867_v2 = vpop.f32.mrf.mxu3 }
 0x1a1   : > { %v1532_v6 = vpop.f32.mrf.mxu2  ;;  %v1356_v8 = vpop.f32.mrf.mxu0 }
 0x1a2   : > { %v3869_v7 = vadd.f32 %v1532_v6, %v1444_v63  ;;  %v1357_v12 = vadd.f32 %v3652_v4, %v1356_v8  ;;  %v1445_v13 = vpop.f32.mrf.mxu1  ;;  %1946 = vmatpush.bf16.msrb.mxu2 %v2993_v62 }
 0x1a4   : > { %v3872_v38 = vadd.f32 %v1445_v13, %v1357_v12 }
 0x1a6   : > { %1947 = vmatpush.bf16.msrb.mxu2 %v2992_v14 }
 0x1a7   : > { %v3880_v34 = vpop.f32.mrf.mxu3 }
 0x1a9   : > { %v3882_v35 = vpop.f32.mrf.mxu2  ;;  %v1359_v44 = vpop.f32.mrf.mxu0 }
 0x1aa   : > { %v1360_v53 = vadd.f32 %v3652_v4, %v1359_v44  ;;  %v1448_v56 = vpop.f32.mrf.mxu1  ;;  %v2991_v44 = vld [vmem:[#allocation7] sm:$0xff] }
 0x1ab   : > { %1948 = vmatpush.bf16.msrb.mxu2 %v2991_v44  ;;  %v2534_v44 = vld [vmem:[%s3525_s30 + $0x260] sm:$0xf0] }
 0x1ac   : > { %v1449_v59 = vadd.f32 %v1448_v56, %v1360_v53  ;;  %1620 = vmatmul.bf16.gmra.mxu3 %v2489_v40  ;;  %1689 = vmatmul.bf16.gmra.mxu0 %v2397_v41  ;;  %v2891_v40 = vld [vmem:[%s3525_s30 + $0x164] sm:$0xf]  ;;  %v2422_v41 = vld [vmem:[%s3525_s30 + $0x178] sm:$0xf0]  ;;  %v2513_v53 = vor.u32 %v2914_v36, %v2510_v28  ;;  %v2421_v56 = vor.u32 %v2894_v33, %v2420_v30 }
 0x1ad   : > { %1778 = vmatmul.bf16.gmra.mxu1 %v2401_v50  ;;  %v2425_v62 = vor.u32 %v2891_v40, %v2422_v41  ;;  %v2920_v41 = vld [vmem:[%s3525_s30 + $0x24c] sm:$0xf] }
 0x1af   : > { %v3885_v63 = vpop.f32.mrf.mxu3 }
 0x1b1   : > { %v1537_v6 = vpop.f32.mrf.mxu2  ;;  %v1361_v12 = vpop.f32.mrf.mxu0 }
 0x1b2   : > { %v3887_v8 = vadd.f32 %v1537_v6, %v1449_v59  ;;  %v1362_v13 = vadd.f32 %v3652_v4, %v1361_v12  ;;  %v1450_v17 = vpop.f32.mrf.mxu1 }
 0x1b4   : > { %v3890_v22 = vadd.f32 %v1450_v17, %v1362_v13 }
 0x1b7   : > { %v3900_v58 = vpop.f32.mrf.mxu3 }
 0x1b9   : > { %v3898_v50 = vpop.f32.mrf.mxu2  ;;  %v1364_v59 = vpop.f32.mrf.mxu0 }
 0x1ba   : > { %v1365_v6 = vadd.f32 %v3652_v4, %v1364_v59  ;;  %v1453_v12 = vpop.f32.mrf.mxu1  ;;  %v2444_v59 = vld [vmem:[%s3525_s30 + $0x190] sm:$0xf] }
 0x1bc   : > { %v1454_v13 = vadd.f32 %v1453_v12, %v1365_v6  ;;  %1625 = vmatmul.bf16.gmra.mxu3 %v2513_v53  ;;  %1694 = vmatmul.bf16.gmra.mxu0 %v2421_v56  ;;  %v2897_v6 = vld [vmem:[%s3525_s30 + $0x194] sm:$0xf]  ;;  %v2446_v12 = vld [vmem:[%s3525_s30 + $0x1a8] sm:$0xf0]  ;;  %v2537_v53 = vor.u32 %v2920_v41, %v2534_v44  ;;  %v2445_v56 = vor.u32 %v2900_v21, %v2444_v59 }
 0x1bd   : > { %1783 = vmatmul.bf16.gmra.mxu1 %v2425_v62  ;;  %v1574_v21 = vadd.f32 %v3862_v47, %v3678_v42 }
 0x1bf   : > { %v3906_v33 = vpop.f32.mrf.mxu3 }
 0x1c1   : > { %v1542_v17 = vpop.f32.mrf.mxu2  ;;  %v1366_v36 = vpop.f32.mrf.mxu0 }
 0x1c2   : > { %v3903_v14 = vadd.f32 %v1542_v17, %v1454_v13  ;;  %v1367_v28 = vadd.f32 %v3652_v4, %v1366_v36  ;;  %v1455_v30 = vpop.f32.mrf.mxu1  ;;  %v2449_v13 = vor.u32 %v2897_v6, %v2446_v12  ;;  %v1572_v4 = vadd.f32 %v3849_v18, %v3665_v24  ;;  %v2926_v12 = vld [vmem:[%s3525_s30 + $0x27c] sm:$0xf]  ;;  %v2906_v24 = vld [vmem:[%s3525_s30 + $0x1d4] sm:$0xf0] }
 0x1c4   : > { %v3908_v40 = vadd.f32 %v1455_v30, %v1367_v28 }
 0x1c7   : > { %v3918_v36 = vpop.f32.mrf.mxu3 }
 0x1c9   : > { %v1660_v62 = vpop.f32.mrf.mxu0 }
 0x1ca   : > { %v1749_v17 = vpop.f32.mrf.mxu1  ;;  %v1661_v28 = vadd.f32 %v1660_v62, %v1572_v4  ;;  %v2561_v62 = vor.u32 %v2926_v12, %v2558_v43  ;;  %v2469_v4 = vor.u32 %v2906_v24, %v2468_v26  ;;  %v2912_v12 = vld [vmem:[%s3525_s30 + $0x204] sm:$0xf0] }
 0x1cc   : > { %1630 = vmatmul.bf16.gmra.mxu3 %v2537_v53  ;;  %1699 = vmatmul.bf16.gmra.mxu0 %v2445_v56  ;;  %v1750_v41 = vadd.f32 %v1749_v17, %v1661_v28  ;;  %v2903_v56 = vld [vmem:[%s3525_s30 + $0x1c4] sm:$0xf]  ;;  %v1577_v17 = vadd.f32 %v3867_v2, %v3683_v51  ;;  %v1490_v28 = vadd.f32 %v3698_v1, %v3686_v55  ;;  %v2932_v51 = vld [vmem:[%s3525_s30 + $0x2ac] sm:$0xf] }
 0x1cd   : > { %1788 = vmatmul.bf16.gmra.mxu1 %v2449_v13  ;;  %v2473_v42 = vor.u32 %v2903_v56, %v2470_v15  ;;  %v2582_v2 = vld [vmem:[%s3525_s30 + $0x2c0] sm:$0xf0]  ;;  %v2494_v56 = vld [vmem:[%s3525_s30 + $0x208] sm:$0xf0] }
 0x1ce   : > { %v1829_v18 = vmax.f32 %v1750_v41, 0.0  ;;  %v1579_v15 = vadd.f32 %v3880_v34, %v1490_v28  ;;  %v2585_v1 = vor.u32 %v2932_v51, %v2582_v2  ;;  %v2918_v51 = vld [vmem:[%s3525_s30 + $0x234] sm:$0xf0] }
 0x1cf   : > { %v3928_v54 = vpop.f32.mrf.mxu3 }
 0x1d1   : > { %v1662_v30 = vpop.f32.mrf.mxu0 }
 0x1d2   : > { %v1663_v44 = vadd.f32 %v1662_v30, %v1574_v21  ;;  %v1751_v59 = vpop.f32.mrf.mxu1 }
 0x1d4   : > { %v1752_v6 = vadd.f32 %v1751_v59, %v1663_v44 }
 0x1d6   : > { %v1830_v53 = vmax.f32 %v1752_v6, 0.0  ;;  %v2492_v6 = vld [vmem:[%s3525_s30 + $0x1f0] sm:$0xf] }
 0x1d7   : > { %v3935_v43 = vpop.f32.mrf.mxu3 }
 0x1d8   : > { %v1861_v13 = vpack.c.bf16 %v1830_v53, %v1829_v18  ;;  %v2909_v53 = vld [vmem:[%s3525_s30 + $0x1f4] sm:$0xf] }
 0x1d9   : > { %v1665_v49 = vpop.f32.mrf.mxu0  ;;  %v2497_v34 = vor.u32 %v2909_v53, %v2494_v56 }
 0x1da   : > { %v1754_v47 = vpop.f32.mrf.mxu1  ;;  %1949 = vmatmul.bf16.vlgmr.msrb.gmra.mxu2 %v1861_v13  ;;  %v1666_v26 = vadd.f32 %v1665_v49, %v1577_v17  ;;  %v2493_v49 = vor.u32 %v2912_v12, %v2492_v6  ;;  %v2915_v12 = vld [vmem:[%s3525_s30 + $0x224] sm:$0xf] }
 0x1dc   : > { %1635 = vmatmul.bf16.gmra.mxu3 %v2561_v62  ;;  %1704 = vmatmul.bf16.gmra.mxu0 %v2469_v4  ;;  %v1755_v30 = vadd.f32 %v1754_v47, %v1666_v26  ;;  %v1495_v47 = vadd.f32 %v3718_v37, %v3707_v27 }
 0x1dd   : > { %1793 = vmatmul.bf16.gmra.mxu1 %v2473_v42  ;;  %v1582_v42 = vadd.f32 %v3885_v63, %v3703_v19  ;;  %v2606_v19 = vld [vmem:[%s3525_s30 + $0x2f0] sm:$0xf0]  ;;  %v2516_v63 = vld [vmem:[%s3525_s30 + $0x220] sm:$0xf] }
 0x1de   : > { %v1831_v24 = vmax.f32 %v1755_v30, 0.0  ;;  %v1584_v28 = vadd.f32 %v3900_v58, %v1495_v47 }
 0x1df   : > { %v3943_v4 = vpop.f32.mrf.mxu3 }
 0x1e1   : > { %v1667_v21 = vpop.f32.mrf.mxu0 }
 0x1e2   : > { %v1668_v41 = vadd.f32 %v1667_v21, %v1579_v15  ;;  %v1756_v44 = vpop.f32.mrf.mxu1 }
 0x1e4   : > { %v1757_v59 = vadd.f32 %v1756_v44, %v1668_v41  ;;  %v2938_v44 = vld [vmem:[%s3525_s30 + $0x2dc] sm:$0xf] }
 0x1e5   : > { %v2609_v37 = vor.u32 %v2938_v44, %v2606_v19 }
 0x1e6   : > { %v1832_v18 = vmax.f32 %v1757_v59, 0.0 }
 0x1e7   : > { %v3951_v59 = vpop.f32.mrf.mxu3 }
 0x1e8   : > { %v1862_v55 = vpack.c.bf16 %v1832_v18, %v1831_v24  ;;  %v2518_v24 = vld [vmem:[%s3525_s30 + $0x238] sm:$0xf0]  ;;  %v2517_v18 = vor.u32 %v2918_v51, %v2516_v63  ;;  %v1505_v51 = vadd.f32 %v3764_v45, %v3754_v32 }
 0x1e9   : > { %v1670_v13 = vpop.f32.mrf.mxu0  ;;  %v2521_v58 = vor.u32 %v2915_v12, %v2518_v24 }
 0x1ea   : > { %v1759_v62 = vpop.f32.mrf.mxu1  ;;  %1954 = vmatmul.bf16.gmra.mxu2 %v1862_v55  ;;  %v1671_v17 = vadd.f32 %v1670_v13, %v1582_v42  ;;  %v1587_v55 = vadd.f32 %v3906_v33, %v3725_v57  ;;  %v2924_v57 = vld [vmem:[%s3525_s30 + $0x264] sm:$0xf0] }
 0x1ec   : > { %1640 = vmatmul.bf16.gmra.mxu3 %v2585_v1  ;;  %1709 = vmatmul.bf16.gmra.mxu0 %v2493_v49  ;;  %v1760_v15 = vadd.f32 %v1759_v62, %v1671_v17  ;;  %v1500_v1 = vadd.f32 %v3742_v11, %v3730_v61 }
 0x1ed   : > { %1798 = vmatmul.bf16.gmra.mxu1 %v2497_v34 }
 0x1ee   : > { %v1833_v2 = vmax.f32 %v1760_v15, 0.0  ;;  %v1589_v34 = vadd.f32 %v3918_v36, %v1500_v1  ;;  %v1592_v36 = vadd.f32 %v3928_v54, %v3749_v29  ;;  %v2566_v1 = vld [vmem:[%s3525_s30 + $0x298] sm:$0xf0] }
 0x1ef   : > { %v3962_v13 = vpop.f32.mrf.mxu3 }
 0x1f1   : > { %v1672_v26 = vpop.f32.mrf.mxu0 }
 0x1f2   : > { %v1673_v21 = vadd.f32 %v1672_v26, %v1584_v28  ;;  %v1761_v30 = vpop.f32.mrf.mxu1  ;;  %v2540_v26 = vld [vmem:[%s3525_s30 + $0x250] sm:$0xf] }
 0x1f3   : > { %v2541_v44 = vor.u32 %v2924_v57, %v2540_v26 }
 0x1f4   : > { %v1762_v41 = vadd.f32 %v1761_v30, %v1673_v21  ;;  %v2921_v21 = vld [vmem:[%s3525_s30 + $0x254] sm:$0xf]  ;;  %v2542_v30 = vld [vmem:[%s3525_s30 + $0x268] sm:$0xf0] }
 0x1f5   : > { %v2545_v11 = vor.u32 %v2921_v21, %v2542_v30  ;;  %v2588_v30 = vld [vmem:[%s3525_s30 + $0x2b0] sm:$0xf] }
 0x1f6   : > { %v1834_v6 = vmax.f32 %v1762_v41, 0.0 }
 0x1f7   : > { %v1603_v19 = vpop.f32.mrf.mxu3 }
 0x1f8   : > { %v1863_v27 = vpack.c.bf16 %v1834_v6, %v1833_v2  ;;  %v1594_v6 = vadd.f32 %v3935_v43, %v1505_v51  ;;  %v1597_v43 = vadd.f32 %v3943_v4, %v3771_v60  ;;  %v2933_v4 = vld [vmem:[%s3525_s30 + $0x2b4] sm:$0xf] }
 0x1f9   : > { %v1675_v53 = vpop.f32.mrf.mxu0 }
 0x1fa   : > { %v1764_v56 = vpop.f32.mrf.mxu1  ;;  %1959 = vmatmul.bf16.gmra.mxu2 %v1863_v27  ;;  %v1676_v49 = vadd.f32 %v1675_v53, %v1587_v55  ;;  %v2927_v55 = vld [vmem:[%s3525_s30 + $0x284] sm:$0xf] }
 0x1fb   : > { %v2569_v32 = vor.u32 %v2927_v55, %v2566_v1 }
 0x1fc   : > { %1645 = vmatmul.bf16.gmra.mxu3 %v2609_v37  ;;  %1714 = vmatmul.bf16.gmra.mxu0 %v2517_v18  ;;  %v1765_v42 = vadd.f32 %v1764_v56, %v1676_v49  ;;  %v2930_v56 = vld [vmem:[%s3525_s30 + $0x294] sm:$0xf0] }
 0x1fd   : > { %1803 = vmatmul.bf16.gmra.mxu1 %v2521_v58  ;;  %v2564_v58 = vld [vmem:[%s3525_s30 + $0x280] sm:$0xf] }
 0x1fe   : > { %v1835_v33 = vmax.f32 %v1765_v42, 0.0 }
 0x1ff   : > { %v3974_v18 = vpop.f32.mrf.mxu3 }
 0x201   : > { %v1677_v62 = vpop.f32.mrf.mxu0 }
 0x202   : > { %v1678_v47 = vadd.f32 %v1677_v62, %v1589_v34  ;;  %v1766_v17 = vpop.f32.mrf.mxu1  ;;  %v2565_v34 = vor.u32 %v2930_v56, %v2564_v58 }
 0x204   : > { %v1767_v28 = vadd.f32 %v1766_v17, %v1678_v47  ;;  %v1510_v47 = vadd.f32 %v3786_v16, %v3776_v3 }
 0x206   : > { %v1836_v15 = vmax.f32 %v1767_v28, 0.0  ;;  %v1599_v28 = vadd.f32 %v3951_v59, %v1510_v47  ;;  %v1602_v59 = vadd.f32 %v3962_v13, %v3792_v31  ;;  %v2939_v31 = vld [vmem:[%s3525_s30 + $0x2e4] sm:$0xf]  ;;  %v2614_v13 = vld [vmem:[%s3525_s30 + $0x2f8] sm:$0xf0] }
 0x207   : > { %v1608_v42 = vpop.f32.mrf.mxu3 }
 0x208   : > { %v1864_v41 = vpack.c.bf16 %v1836_v15, %v1835_v33 }
 0x209   : > { %v1680_v61 = vpop.f32.mrf.mxu0 }
 0x20a   : > { %v1769_v63 = vpop.f32.mrf.mxu1  ;;  %1964 = vmatmul.bf16.gmra.mxu2 %v1864_v41  ;;  %v1681_v2 = vadd.f32 %v1680_v61, %v1592_v36  ;;  %v2936_v41 = vld [vmem:[%s3525_s30 + $0x2c4] sm:$0xf0]  ;;  %v2590_v61 = vld [vmem:[%s3525_s30 + $0x2c8] sm:$0xf0] }
 0x20b   : > { %v2589_v36 = vor.u32 %v2936_v41, %v2588_v30  ;;  %v2593_v3 = vor.u32 %v2933_v4, %v2590_v61 }
 0x20c   : > { %1719 = vmatmul.bf16.gmra.mxu0 %v2541_v44  ;;  %v1770_v24 = vadd.f32 %v1769_v63, %v1681_v2  ;;  %v1515_v2 = vadd.f32 %v3803_v52, %v3795_v39  ;;  %v1607_v52 = vadd.f32 %v3974_v18, %v3812_v5  ;;  %v1525_v18 = vadd.f32 %v3843_v10, %v3835_v0 }
 0x20d   : > { %1808 = vmatmul.bf16.gmra.mxu1 %v2545_v11  ;;  %v1530_v10 = vadd.f32 %v3864_v48, %v3854_v23 }
 0x20e   : > { %v1837_v29 = vmax.f32 %v1770_v24, 0.0 }
 0x20f   : > { %v1611_v11 = vpop.f32.mrf.mxu3 }
 0x210   : > { %v1612_v5 = vadd.f32 %v1611_v11, %v3832_v46 }
 0x211   : > { %v1682_v12 = vpop.f32.mrf.mxu0 }
 0x212   : > { %v1683_v27 = vadd.f32 %v1682_v12, %v1594_v6  ;;  %v1771_v37 = vpop.f32.mrf.mxu1  ;;  %v1604_v12 = vadd.f32 %v1603_v19, %v1515_v2  ;;  %v1520_v19 = vadd.f32 %v3823_v25, %v3815_v9 }
 0x214   : > { %v1772_v53 = vadd.f32 %v1771_v37, %v1683_v27  ;;  %v1609_v47 = vadd.f32 %v1608_v42, %v1520_v19 }
 0x216   : > { %v1838_v54 = vmax.f32 %v1772_v53, 0.0 }
 0x217   : > { %v1613_v24 = vpop.f32.mrf.mxu3 }
 0x218   : > { %v1865_v49 = vpack.c.bf16 %v1838_v54, %v1837_v29  ;;  %v2612_v29 = vld [vmem:[%s3525_s30 + $0x2e0] sm:$0xf]  ;;  %v2942_v54 = vld [vmem:[%s3525_s30 + $0x2f4] sm:$0xf0]  ;;  %v1614_v42 = vadd.f32 %v1613_v24, %v1525_v18 }
 0x219   : > { %v1685_v62 = vpop.f32.mrf.mxu0 }
 0x21a   : > { %v1774_v45 = vpop.f32.mrf.mxu1  ;;  %1969 = vmatmul.bf16.gmra.mxu2 %v1865_v49  ;;  %v1686_v17 = vadd.f32 %v1685_v62, %v1597_v43 }
 0x21c   : > { %1724 = vmatmul.bf16.gmra.mxu0 %v2565_v34  ;;  %v1775_v57 = vadd.f32 %v1774_v45, %v1686_v17  ;;  %v2613_v34 = vor.u32 %v2942_v54, %v2612_v29 }
 0x21d   : > { %1813 = vmatmul.bf16.gmra.mxu1 %v2569_v32  ;;  %v2617_v32 = vor.u32 %v2939_v31, %v2614_v13 }
 0x21e   : > { %v1839_v44 = vmax.f32 %v1775_v57, 0.0 }
 0x21f   : > { %v1616_v39 = vpop.f32.mrf.mxu3 }
 0x220   : > { %v1617_v11 = vadd.f32 %v1616_v39, %v3851_v20 }
 0x221   : > { %v1687_v26 = vpop.f32.mrf.mxu0 }
 0x222   : > { %v1688_v33 = vadd.f32 %v1687_v26, %v1599_v28  ;;  %v1776_v15 = vpop.f32.mrf.mxu1 }
 0x224   : > { %v1777_v21 = vadd.f32 %v1776_v15, %v1688_v33 }
 0x226   : > { %v1840_v60 = vmax.f32 %v1777_v21, 0.0 }
 0x227   : > { %v1618_v15 = vpop.f32.mrf.mxu3 }
 0x228   : > { %v1866_v63 = vpack.c.bf16 %v1840_v60, %v1839_v44 }
 0x229   : > { %v1690_v51 = vpop.f32.mrf.mxu0 }
 0x22a   : > { %v1779_v16 = vpop.f32.mrf.mxu1  ;;  %1974 = vmatmul.bf16.gmra.mxu2 %v1866_v63  ;;  %v1691_v6 = vadd.f32 %v1690_v51, %v1602_v59 }
 0x22c   : > { %1729 = vmatmul.bf16.gmra.mxu0 %v2589_v36  ;;  %v1780_v37 = vadd.f32 %v1779_v16, %v1691_v6 }
 0x22d   : > { %1818 = vmatmul.bf16.gmra.mxu1 %v2593_v3  ;;  %v4004_v3 = vpop.f32.mrf.mxu2 }
 0x22e   : > { %v1841_v55 = vmax.f32 %v1780_v37, 0.0 }
 0x22f   : > { %v1621_v25 = vpop.f32.mrf.mxu3 }
 0x230   : > { %v1622_v23 = vadd.f32 %v1621_v25, %v3869_v7 }
 0x231   : > { %v1692_v27 = vpop.f32.mrf.mxu0 }
 0x232   : > { %v1693_v53 = vadd.f32 %v1692_v27, %v1604_v12  ;;  %v1781_v58 = vpop.f32.mrf.mxu1  ;;  %v1619_v27 = vadd.f32 %v1618_v15, %v1530_v10 }
 0x234   : > { %v1782_v56 = vadd.f32 %v1781_v58, %v1693_v53 }
 0x236   : > { %v1842_v1 = vmax.f32 %v1782_v56, 0.0 }
 0x237   : > { %v1623_v6 = vpop.f32.mrf.mxu3 }
 0x238   : > { %v1867_v49 = vpack.c.bf16 %v1842_v1, %v1841_v55 }
 0x239   : > { %v1695_v62 = vpop.f32.mrf.mxu0 }
 0x23a   : > { %v1784_v45 = vpop.f32.mrf.mxu1  ;;  %1979 = vmatmul.bf16.gmra.mxu2 %v1867_v49  ;;  %v1696_v43 = vadd.f32 %v1695_v62, %v1607_v52 }
 0x23c   : > { %1734 = vmatmul.bf16.gmra.mxu0 %v2613_v34  ;;  %v1785_v28 = vadd.f32 %v1784_v45, %v1696_v43 }
 0x23d   : > { %1823 = vmatmul.bf16.gmra.mxu1 %v2617_v32  ;;  %v1535_v32 = vadd.f32 %v3882_v35, %v3872_v38 }
 0x23e   : > { %v1843_v21 = vmax.f32 %v1785_v28, 0.0 }
 0x23f   : > { %v1626_v29 = vpop.f32.mrf.mxu3  ;;  %v1624_v39 = vadd.f32 %v1623_v6, %v1535_v32  ;;  %v1545_v6 = vadd.f32 %v4004_v3, %v3908_v40  ;;  %v4136_v40 = vld [vmem:[#allocation19_spill] sm:$0xff] }
 0x240   : > { %v1627_v38 = vadd.f32 %v1626_v29, %v3887_v8 }
 0x241   : > { %v1697_v17 = vpop.f32.mrf.mxu0 }
 0x242   : > { %v1698_v26 = vadd.f32 %v1697_v17, %v1609_v47  ;;  %v1786_v57 = vpop.f32.mrf.mxu1 }
 0x244   : > { %v1787_v33 = vadd.f32 %v1786_v57, %v1698_v26 }
 0x246   : > { %v1844_v30 = vmax.f32 %v1787_v33, 0.0 }
 0x247   : > { %v1628_v48 = vpop.f32.mrf.mxu3 }
 0x248   : > { %v1868_v41 = vpack.c.bf16 %v1844_v30, %v1843_v21 }
 0x249   : > { %v1700_v44 = vpop.f32.mrf.mxu0 }
 0x24a   : > { %1984 = vmatmul.bf16.gmra.mxu2 %v1868_v41  ;;  %v1789_v60 = vpop.f32.mrf.mxu1  ;;  %v1701_v9 = vadd.f32 %v1700_v44, %v1612_v5  ;;  %v1540_v41 = vadd.f32 %v3898_v50, %v3890_v22 }
 0x24c   : > { %v1790_v61 = vadd.f32 %v1789_v60, %v1701_v9  ;;  %v1629_v60 = vadd.f32 %v1628_v48, %v1540_v41 }
 0x24e   : > { %v1845_v16 = vmax.f32 %v1790_v61, 0.0 }
 0x24f   : > { %v1631_v33 = vpop.f32.mrf.mxu3 }
 0x250   : > { %v1632_v50 = vadd.f32 %v1631_v33, %v3903_v14 }
 0x251   : > { %v1702_v4 = vpop.f32.mrf.mxu0 }
 0x252   : > { %v1703_v63 = vadd.f32 %v1702_v4, %v1614_v42  ;;  %v1791_v36 = vpop.f32.mrf.mxu1 }
 0x254   : > { %v1792_v51 = vadd.f32 %v1791_v36, %v1703_v63 }
 0x256   : > { %v1846_v59 = vmax.f32 %v1792_v51, 0.0 }
 0x257   : > { %v1633_v5 = vpop.f32.mrf.mxu3 }
 0x258   : > { %v1869_v2 = vpack.c.bf16 %v1846_v59, %v1845_v16 }
 0x259   : > { %v1705_v12 = vpop.f32.mrf.mxu0 }
 0x25a   : > { %1989 = vmatmul.bf16.gmra.mxu2 %v1869_v2  ;;  %v1794_v46 = vpop.f32.mrf.mxu1  ;;  %v1706_v24 = vadd.f32 %v1705_v12, %v1617_v11 }
 0x25c   : > { %v1795_v53 = vadd.f32 %v1794_v46, %v1706_v24  ;;  %v1634_v46 = vadd.f32 %v1633_v5, %v1545_v6 }
 0x25d   : > { %v4007_v0 = vpop.f32.mrf.mxu2 }
 0x25e   : > { %v1847_v1 = vmax.f32 %v1795_v53, 0.0 }
 0x25f   : > { %v1636_v22 = vpop.f32.mrf.mxu3 }
 0x260   : > { %v1637_v3 = vadd.f32 %v1636_v22, %v4136_v40 }
 0x261   : > { %v1707_v37 = vpop.f32.mrf.mxu0 }
 0x262   : > { %v1708_v58 = vadd.f32 %v1707_v37, %v1619_v27  ;;  %v1796_v56 = vpop.f32.mrf.mxu1 }
 0x264   : > { %v1797_v54 = vadd.f32 %v1796_v56, %v1708_v58 }
 0x265   : > { %v4011_v55 = vpop.f32.mrf.mxu2 }
 0x266   : > { %v1848_v31 = vmax.f32 %v1797_v54, 0.0  ;;  %v2031_v20 = vpack.c.bf16 %v4011_v55, %v4007_v0 }
 0x267   : > { %v1638_v53 = vpop.f32.mrf.mxu3 }
 0x268   : > { %v1870_v13 = vpack.c.bf16 %v1848_v31, %v1847_v1 }
 0x269   : > { %v1710_v49 = vpop.f32.mrf.mxu0 }
 0x26a   : > { %1994 = vmatmul.bf16.gmra.mxu2 %v1870_v13  ;;  %v1799_v34 = vpop.f32.mrf.mxu1  ;;  %v1711_v45 = vadd.f32 %v1710_v49, %v1622_v23  ;;  %v4137_v23 = vld [vmem:[#allocation20_spill] sm:$0xff] }
 0x26b   : > { %v1639_v48 = vadd.f32 %v1638_v53, %v4137_v23 }
 0x26c   : > { %v1800_v19 = vadd.f32 %v1799_v34, %v1711_v45 }
 0x26d   : > { %v4016_v62 = vpop.f32.mrf.mxu2 }
 0x26e   : > { %v1849_v26 = vmax.f32 %v1800_v19, 0.0 }
 0x26f   : > { %v1641_v34 = vpop.f32.mrf.mxu3 }
 0x271   : > { %v1712_v52 = vpop.f32.mrf.mxu0 }
 0x272   : > { %v1713_v43 = vadd.f32 %v1712_v52, %v1624_v39  ;;  %v1801_v47 = vpop.f32.mrf.mxu1 }
 0x274   : > { %v1802_v17 = vadd.f32 %v1801_v47, %v1713_v43 }
 0x275   : > { %v4020_v28 = vpop.f32.mrf.mxu2 }
 0x276   : > { %v1850_v57 = vmax.f32 %v1802_v17, 0.0  ;;  %v2032_v7 = vpack.c.bf16 %v4020_v28, %v4016_v62 }
 0x278   : > { %v1871_v15 = vpack.c.bf16 %v1850_v57, %v1849_v26  ;;  %v1643_v57 = vpop.f32.mrf.mxu3 }
 0x279   : > { %v1715_v21 = vpop.f32.mrf.mxu0 }
 0x27a   : > { %1999 = vmatmul.bf16.gmra.mxu2 %v1871_v15  ;;  %v1804_v30 = vpop.f32.mrf.mxu1  ;;  %v1716_v44 = vadd.f32 %v1715_v21, %v1627_v38  ;;  %v4138_v21 = vld [vmem:[#allocation21_spill] sm:$0xff] }
 0x27c   : > { %v1805_v9 = vadd.f32 %v1804_v30, %v1716_v44  ;;  %v1642_v30 = vadd.f32 %v1641_v34, %v4138_v21  ;;  %v4139_v44 = vld [vmem:[#allocation22_spill] sm:$0xff] }
 0x27d   : > { %v4025_v35 = vpop.f32.mrf.mxu2 }
 0x27e   : > { %v1851_v63 = vmax.f32 %v1805_v9, 0.0 }
 0x281   : > { %v1717_v18 = vpop.f32.mrf.mxu0 }
 0x282   : > { %v1718_v25 = vadd.f32 %v1717_v18, %v1629_v60  ;;  %v1806_v42 = vpop.f32.mrf.mxu1  ;;  %v1644_v60 = vadd.f32 %v1643_v57, %v4139_v44 }
 0x284   : > { %v1807_v4 = vadd.f32 %v1806_v42, %v1718_v25  ;;  %v1646_v42 = vpop.f32.mrf.mxu3 }
 0x285   : > { %v4029_v61 = vpop.f32.mrf.mxu2 }
 0x286   : > { %v1852_v36 = vmax.f32 %v1807_v4, 0.0  ;;  %v2033_v8 = vpack.c.bf16 %v4029_v61, %v4025_v35 }
 0x288   : > { %v1872_v51 = vpack.c.bf16 %v1852_v36, %v1851_v63 }
 0x289   : > { %v1720_v16 = vpop.f32.mrf.mxu0 }
 0x28a   : > { %2004 = vmatmul.bf16.gmra.mxu2 %v1872_v51  ;;  %v1809_v59 = vpop.f32.mrf.mxu1  ;;  %v1721_v12 = vadd.f32 %v1720_v16, %v1632_v50  ;;  %v4140_v50 = vld [vmem:[#allocation23_spill] sm:$0xff] }
 0x28b   : > { %v1647_v6 = vadd.f32 %v1646_v42, %v4140_v50 }
 0x28c   : > { %v1810_v10 = vadd.f32 %v1809_v59, %v1721_v12  ;;  %v1648_v12 = vpop.f32.mrf.mxu3 }
 0x28d   : > { %v4034_v2 = vpop.f32.mrf.mxu2 }
 0x28e   : > { %v1853_v56 = vmax.f32 %v1810_v10, 0.0  ;;  %v4141_v10 = vld [vmem:[#allocation24_spill] sm:$0xff] }
 0x291   : > { %v1722_v11 = vpop.f32.mrf.mxu0 }
 0x292   : > { %v1723_v24 = vadd.f32 %v1722_v11, %v1634_v46  ;;  %v1811_v27 = vpop.f32.mrf.mxu1 }
 0x294   : > { %v1812_v37 = vadd.f32 %v1811_v27, %v1723_v24  ;;  %v1649_v24 = vadd.f32 %v1648_v12, %v4141_v10 }
 0x295   : > { %v4038_v58 = vpop.f32.mrf.mxu2 }
 0x296   : > { %v1854_v29 = vmax.f32 %v1812_v37, 0.0  ;;  %v2034_v14 = vpack.c.bf16 %v4038_v58, %v4034_v2 }
 0x298   : > { %v1873_v54 = vpack.c.bf16 %v1854_v29, %v1853_v56 }
 0x299   : > { %v1725_v1 = vpop.f32.mrf.mxu0 }
 0x29a   : > { %2009 = vmatmul.bf16.gmra.mxu2 %v1873_v54  ;;  %v1814_v31 = vpop.f32.mrf.mxu1  ;;  %v1726_v49 = vadd.f32 %v1725_v1, %v1637_v3 }
 0x29c   : > { %v1815_v45 = vadd.f32 %v1814_v31, %v1726_v49 }
 0x29d   : > { %v1970_v13 = vpop.f32.mrf.mxu2 }
 0x29e   : > { %v1855_v47 = vmax.f32 %v1815_v45, 0.0 }
 0x2a1   : > { %v1727_v32 = vpop.f32.mrf.mxu0 }
 0x2a2   : > { %v1728_v39 = vadd.f32 %v1727_v32, %v1639_v48  ;;  %v1816_v52 = vpop.f32.mrf.mxu1 }
 0x2a4   : > { %v1817_v19 = vadd.f32 %v1816_v52, %v1728_v39 }
 0x2a5   : > { %v1972_v43 = vpop.f32.mrf.mxu2 }
 0x2a6   : > { %v1856_v17 = vmax.f32 %v1817_v19, 0.0  ;;  %v2035_v45 = vpack.c.bf16 %v1972_v43, %v1970_v13 }
 0x2a8   : > { %v1874_v26 = vpack.c.bf16 %v1856_v17, %v1855_v47 }
 0x2a9   : > { %v1730_v33 = vpop.f32.mrf.mxu0 }
 0x2aa   : > { %2014 = vmatmul.bf16.gmra.mxu2 %v1874_v26  ;;  %v1819_v15 = vpop.f32.mrf.mxu1  ;;  %v1731_v41 = vadd.f32 %v1730_v33, %v1642_v30  ;;  %v2030_v33 = vld [vmem:[%s3542_s29] sm:$0xff] }
 0x2ac   : > { %v1820_v18 = vadd.f32 %v1819_v15, %v1731_v41  ;;  %v2048_v15 = vunpack.c.l.b16 %v2030_v33  ;;  %v2049_v41 = vunpack.c.h.b16 %v2030_v33 }
 0x2ad   : > { %v1975_v38 = vpop.f32.mrf.mxu2 }
 0x2ae   : > { %v1857_v36 = vmax.f32 %v1820_v18, 0.0  ;;  %v2050_v28 = vpack.c.b16 %v2048_v15, %v2048_v15  ;;  %v2051_v44 = vpack.c.b16 %v2049_v41, %v2049_v41 }
 0x2b1   : > { %v1732_v5 = vpop.f32.mrf.mxu0 }
 0x2b2   : > { %v1733_v9 = vadd.f32 %v1732_v5, %v1644_v60  ;;  %v1821_v25 = vpop.f32.mrf.mxu1 }
 0x2b4   : > { %v1822_v4 = vadd.f32 %v1821_v25, %v1733_v9 }
 0x2b5   : > { %v1977_v63 = vpop.f32.mrf.mxu2 }
 0x2b6   : > { %v1858_v51 = vmax.f32 %v1822_v4, 0.0  ;;  %v2036_v32 = vpack.c.bf16 %v1977_v63, %v1975_v38 }
 0x2b8   : > { %v1875_v16 = vpack.c.bf16 %v1858_v51, %v1857_v36 }
 0x2b9   : > { %v1735_v59 = vpop.f32.mrf.mxu0 }
 0x2ba   : > { %2019 = vmatmul.bf16.gmra.mxu2 %v1875_v16  ;;  %v1824_v22 = vpop.f32.mrf.mxu1  ;;  %v1736_v11 = vadd.f32 %v1735_v59, %v1647_v6 }
 0x2bc   : > { %v1825_v37 = vadd.f32 %v1824_v22, %v1736_v11 }
 0x2bd   : > { %v1980_v46 = vpop.f32.mrf.mxu2 }
 0x2be   : > { %v1859_v1 = vmax.f32 %v1825_v37, 0.0 }
 0x2c1   : > { %v1737_v27 = vpop.f32.mrf.mxu0 }
 0x2c2   : > { %v1738_v53 = vadd.f32 %v1737_v27, %v1649_v24  ;;  %v1826_v56 = vpop.f32.mrf.mxu1 }
 0x2c4   : > { %v1827_v29 = vadd.f32 %v1826_v56, %v1738_v53 }
 0x2c5   : > { %v1982_v54 = vpop.f32.mrf.mxu2 }
 0x2c6   : > { %v1860_v31 = vmax.f32 %v1827_v29, 0.0  ;;  %v2037_v23 = vpack.c.bf16 %v1982_v54, %v1980_v46 }
 0x2c8   : > { %v1876_v40 = vpack.c.bf16 %v1860_v31, %v1859_v1 }
 0x2ca   : > { %2024 = vmatmul.bf16.gmra.mxu2 %v1876_v40 }
 0x2cd   : > { %v1985_v3 = vpop.f32.mrf.mxu2 }
 0x2d5   : > { %v1987_v49 = vpop.f32.mrf.mxu2 }
 0x2d6   : > { %v2038_v34 = vpack.c.bf16 %v1987_v49, %v1985_v3 }
 0x2d8   : > { %2054 = vmatpush.bf16.msra.mxu3 %v2038_v34 }
 0x2dc   : > { %2055 = vmatpush.bf16.msra.mxu3 %v2037_v23 }
 0x2dd   : > { %v1990_v48 = vpop.f32.mrf.mxu2 }
 0x2e0   : > { %2056 = vmatpush.bf16.msra.mxu3 %v2036_v32 }
 0x2e4   : > { %2057 = vmatpush.bf16.msra.mxu3 %v2035_v45 }
 0x2e5   : > { %v1992_v39 = vpop.f32.mrf.mxu2 }
 0x2e6   : > { %v2039_v52 = vpack.c.bf16 %v1992_v39, %v1990_v48 }
 0x2e8   : > { %2058 = vmatpush.bf16.msra.mxu3 %v2034_v14 }
 0x2ec   : > { %2059 = vmatpush.bf16.msra.mxu3 %v2033_v8 }
 0x2ed   : > { %v1995_v19 = vpop.f32.mrf.mxu2 }
 0x2f0   : > { %2060 = vmatpush.bf16.msra.mxu3 %v2032_v7 }
 0x2f4   : > { %2061 = vmatpush.bf16.msra.mxu3 %v2031_v20 }
 0x2f5   : > { %v1997_v13 = vpop.f32.mrf.mxu2 }
 0x2f6   : > { %v2040_v43 = vpack.c.bf16 %v1997_v13, %v1995_v19 }
 0x2f7   : > { %2062 = vmatmul.bf16.vlgmr.msra.gmra.mxu3 %v2050_v28 }
 0x2fd   : > { %v2000_v47 = vpop.f32.mrf.mxu2 }
 0x305   : > { %v2002_v17 = vpop.f32.mrf.mxu2 }
 0x306   : > { %v2041_v2 = vpack.c.bf16 %v2002_v17, %v2000_v47 }
 0x30d   : > { %v2005_v58 = vpop.f32.mrf.mxu2 }
 0x315   : > { %v2007_v14 = vpop.f32.mrf.mxu2 }
 0x316   : > { %v2042_v26 = vpack.c.bf16 %v2007_v14, %v2005_v58 }
 0x31d   : > { %v2010_v35 = vpop.f32.mrf.mxu2 }
 0x325   : > { %v2012_v61 = vpop.f32.mrf.mxu2 }
 0x326   : > { %v2043_v38 = vpack.c.bf16 %v2012_v61, %v2010_v35 }
 0x32d   : > { %v2015_v8 = vpop.f32.mrf.mxu2 }
 0x335   : > { %v2017_v57 = vpop.f32.mrf.mxu2 }
 0x336   : > { %v2044_v30 = vpack.c.bf16 %v2017_v57, %v2015_v8 }
 0x33d   : > { %v2020_v62 = vpop.f32.mrf.mxu2 }
 0x345   : > { %v2022_v7 = vpop.f32.mrf.mxu2 }
 0x346   : > { %v2045_v21 = vpack.c.bf16 %v2022_v7, %v2020_v62 }
 0x34d   : > { %v2025_v0 = vpop.f32.mrf.mxu2 }
 0x355   : > { %v2027_v55 = vpop.f32.mrf.mxu2 }
 0x356   : > { %v2046_v20 = vpack.c.bf16 %v2027_v55, %v2025_v0 }
 0x358   : > { %2067 = vmatpush.bf16.msrb.mxu3 %v2046_v20 }
 0x35c   : > { %2068 = vmatpush.bf16.msrb.mxu3 %v2045_v21 }
 0x360   : > { %2069 = vmatpush.bf16.msrb.mxu3 %v2044_v30 }
 0x364   : > { %2070 = vmatpush.bf16.msrb.mxu3 %v2043_v38 }
 0x368   : > { %2071 = vmatpush.bf16.msrb.mxu3 %v2042_v26 }
 0x36c   : > { %2072 = vmatpush.bf16.msrb.mxu3 %v2041_v2 }
 0x370   : > { %2073 = vmatpush.bf16.msrb.mxu3 %v2040_v43 }
 0x374   : > { %2074 = vmatpush.bf16.msrb.mxu3 %v2039_v52 }
 0x377   : > { %2075 = vmatmul.bf16.vlgmr.msrb.gmra.mxu3 %v2051_v44 }
 0x37a   : > { %v2063_v60 = vpop.f32.mrf.mxu3 }
 0x382   : > { %v2065_v5 = vpop.f32.mrf.mxu3 }
 0x3fa   : > { %v2076_v18 = vpop.f32.mrf.mxu3 }
 0x3fb   : > { %v2077_v9 = vadd.f32 %v2076_v18, %v2063_v60 }
 0x3fd   : > { %2080 = vst [vmem:[%s330_s9] sm:$0xff] %v2077_v9 }
 0x3fe   : > { %3290 = shalt.err (!%p3287_p13)
}
 0x3ff   : > { %3042 = dma.vmem_to_hbm [thread:$0]  (%p3455_p5), %s2095_s10, 128, %s2097_s15, %s2082_s17  }
 0x402   : > { %v2078_v25 = vpop.f32.mrf.mxu3 }
 0x403 PF: > { %p3072_p0 = scmp.ge.s32.totalorder %s3341_s21, 2  ;;  %s2108_s8 = sand.u32 1, %s3329_s18  }
 0x404   : > { %s2109_s13 = scalar_lea.sflag [#allocation4], %s2108_s8 }
 0x405   : > { %p3062_p7 = pnand %p3072_p0, %p3415_p6 }
 0x407   : > { %p3063_p8 = pneg %p3062_p7 }
 0x409   : > { %3324 = dma.done.wait (%p3063_p8), %s2109_s13, 128  }
 0x40a   : > { %3326 = vsyncadd (%p3063_p8), %s2109_s13, 4294967168  ;;  %s4142_s21 = sld [smem:[#allocation17_spill]]  ;;  %s4144_s18 = smov %s3333_s19 }
 0x40b   : > { %s4143_s27 = sld [smem:[#allocation18_spill]]  ;;  %s4145_s19 = smov %s3337_s20 }
 0x410   : > { %p20_p9 = scmp.ge.s32.totalorder %s4142_s21, 5  }
 0x411   : > { %s4146_s20 = smov %s4143_s27 }
 0x412   :  { %22 = sbr.rel (!%p20_p9) target bundleno = 12 (0xc), region = 108 }
 0x417   :  { %2115 = vsyncpa [#allocation3], 1 }
 0x418   :  { %2117 = vsyncpa [#allocation3 + $0x1], 1 }
 0x419   :  { %2118 = vsyncpa [#allocation6], 1 }
 0x41a   :  { %2119 = vsyncpa [#allocation9], 1 }
 0x41b   :  { %2120 = vsyncpa [#allocation4], 1 }
 0x41c   :  { %2122 = vsyncpa [#allocation4 + $0x1], 1 }

</bundles_post_ra>
